<compile_context>
chip_gen: v7x
topology: tpu7x:2x2x1
jax: 0.10.0
libtpu: 0.0.40
codegen_flags: <defaults>
</compile_context>

<pallas_src>
import functools
import math

import jax
import jax.numpy as jnp
from jax.experimental import pallas as pl
from jax.experimental.pallas import tpu as pltpu

# ----------------------------- config (scaled-down ViT) -----------------------------
IN_CHANS = 5          # as set by the module: Conv2d(in_channels=5, ...)
PATCH = 16            # kernel_size=(16,16), stride=(16,16)
IMG = 32              # -> 2x2 = 4 patches (+1 cls token = 5 tokens, padded to 8)
EMBED_DIM = 128       # 768 in the real vit_base
DEPTH = 2             # 12 in the real vit_base
NUM_HEADS = 4         # 12 in the real vit_base
MLP_DIM = 4 * EMBED_DIM
NUM_CLASSES = 9       # output=9
NUM_CLASSES_PAD = 128  # lane-dense head output, sliced back to 9
LN_EPS = 1e-6         # timm ViT LayerNorm eps
TILE_M = 256          # row tile for the linear kernels
VMEM_LIMIT = 32 * 1024 * 1024  # explicit budget, safe on v5e/v6e/v7x


def _round_up(x, m):
    return ((x + m - 1) // m) * m


# ----------------------------- fused linear kernel -----------------------------
# [optional LN on x] -> (bf16 x bf16) matmul w/ f32 acc -> +bias -> [GELU] -> [+residual]
def _fused_linear_kernel(*refs, has_ln, has_res, activation, eps):
    idx = 0
    x_ref = refs[idx]; idx += 1
    if has_ln:
        g_ref = refs[idx]; beta_ref = refs[idx + 1]; idx += 2
    w_ref = refs[idx]; idx += 1
    bias_ref = refs[idx]; idx += 1
    if has_res:
        res_ref = refs[idx]; idx += 1
    o_ref = refs[idx]

    x = x_ref[...].astype(jnp.float32)
    if has_ln:
        # LayerNorm statistics in f32 (biased variance, matches PyTorch)
        mean = jnp.mean(x, axis=-1, keepdims=True)
        var = jnp.mean(jnp.square(x - mean), axis=-1, keepdims=True)
        x = (x - mean) * jax.lax.rsqrt(var + eps)
        x = x * g_ref[...] + beta_ref[...]

    acc = jnp.dot(x.astype(w_ref.dtype), w_ref[...],
                  preferred_element_type=jnp.float32)
    acc = acc + bias_ref[...]
    if activation == "gelu":
        # exact (erf) GELU, matching torch.nn.GELU() default used by timm ViT MLP
        acc = 0.5 * acc * (1.0 + jax.lax.erf(acc * (1.0 / math.sqrt(2.0))))
    if has_res:
        acc = acc + res_ref[...].astype(jnp.float32)
    o_ref[...] = acc.astype(o_ref.dtype)


def fused_linear(x, w, b, *, gamma=None, beta=None, residual=None,
                 activation=None, tile_m=TILE_M):
    M, K = x.shape
    N = w.shape[1]
    tm = min(tile_m, M)
    grid = (pl.cdiv(M, tm),)
    has_ln = gamma is not None
    has_res = residual is not None

    in_specs = [pl.BlockSpec((tm, K), lambda i: (i, 0))]
    args = [x]
    if has_ln:
        in_specs += [pl.BlockSpec((1, K), lambda i: (0, 0)),
                     pl.BlockSpec((1, K), lambda i: (0, 0))]
        args += [gamma.reshape(1, K), beta.reshape(1, K)]
    in_specs += [pl.BlockSpec((K, N), lambda i: (0, 0)),
                 pl.BlockSpec((1, N), lambda i: (0, 0))]
    args += [w, b.reshape(1, N)]
    if has_res:
        in_specs += [pl.BlockSpec((tm, N), lambda i: (i, 0))]
        args += [residual]

    kernel = functools.partial(_fused_linear_kernel, has_ln=has_ln,
                               has_res=has_res, activation=activation, eps=LN_EPS)
    return pl.pallas_call(
        kernel,
        out_shape=jax.ShapeDtypeStruct((M, N), jnp.float32),
        grid=grid,
        in_specs=in_specs,
        out_specs=pl.BlockSpec((tm, N), lambda i: (i, 0)),
        compiler_params=pltpu.CompilerParams(
            dimension_semantics=("parallel",),
            vmem_limit_bytes=VMEM_LIMIT),
    )(*args)


# ----------------------------- attention kernel -----------------------------
# One batch (all heads) per grid step; qkv stays in its native (S, 3*D) layout and each
# head is sliced in-kernel; single lane-dense (S, D) store of the concatenated heads.
def _attention_kernel(qkv_ref, o_ref, *, num_heads, dh, scale, s_real):
    qkv = qkv_ref[0].astype(jnp.float32)                       # (S, 3D)
    S = qkv.shape[0]
    D = num_heads * dh
    # mask out padded key positions (tokens >= s_real)
    key_mask = jax.lax.broadcasted_iota(jnp.int32, (1, S), 1) < s_real   # (1, S)

    outs = []
    for h in range(num_heads):                                  # unrolled (small)
        q = qkv[:, h * dh:(h + 1) * dh]
        k = qkv[:, D + h * dh:D + (h + 1) * dh]
        v = qkv[:, 2 * D + h * dh:2 * D + (h + 1) * dh]
        s = jax.lax.dot_general(
            q.astype(jnp.bfloat16), k.astype(jnp.bfloat16),
            (((1,), (1,)), ((), ())),
            preferred_element_type=jnp.float32) * scale          # (S, S) = q @ k^T * scale
        s = jnp.where(key_mask, s, jnp.float32(-1e30))
        s = s - jnp.max(s, axis=-1, keepdims=True)
        p = jnp.exp(s)
        p = p * pl.reciprocal(jnp.sum(p, axis=-1, keepdims=True), approx=True)
        outs.append(jnp.dot(p.astype(jnp.bfloat16), v.astype(jnp.bfloat16),
                            preferred_element_type=jnp.float32))  # (S, dh)
    o_ref[0] = jnp.concatenate(outs, axis=-1).astype(o_ref.dtype)  # lane-dense (S, D) store


def attention(qkv, *, num_heads, s_real):
    B, S, threeD = qkv.shape
    D = threeD // 3
    dh = D // num_heads
    kernel = functools.partial(_attention_kernel, num_heads=num_heads, dh=dh,
                               scale=dh ** -0.5, s_real=s_real)
    return pl.pallas_call(
        kernel,
        out_shape=jax.ShapeDtypeStruct((B, S, D), jnp.float32),
        grid=(B,),
        in_specs=[pl.BlockSpec((1, S, threeD), lambda b: (b, 0, 0))],
        out_specs=pl.BlockSpec((1, S, D), lambda b: (b, 0, 0)),
        compiler_params=pltpu.CompilerParams(
            dimension_semantics=("parallel",),
            vmem_limit_bytes=VMEM_LIMIT),
    )(qkv)


# ----------------------------- parameters -----------------------------
def init_params(key):
    keys = iter(jax.random.split(key, 64))

    def nrm(shape, std=0.02, dtype=jnp.float32):
        return (std * jax.random.normal(next(keys), shape)).astype(dtype)

    D, Md = EMBED_DIM, MLP_DIM
    num_patches = (IMG // PATCH) ** 2
    # patch-embed conv weight built in PyTorch layout (D, C, kh, kw), flattened to a matmul
    conv_w = nrm((D, IN_CHANS, PATCH, PATCH))
    head_w = nrm((D, NUM_CLASSES))
    head_w = jnp.pad(head_w, ((0, 0), (0, NUM_CLASSES_PAD - NUM_CLASSES)))
    params = {
        "patch_w": conv_w.reshape(D, -1).T.astype(jnp.bfloat16),    # (C*ph*pw, D) bf16
        "patch_b": jnp.zeros((D,), jnp.float32),
        "cls_token": nrm((1, 1, D)),
        "pos_embed": nrm((1, num_patches + 1, D)),
        "ln_g": jnp.ones((D,), jnp.float32),
        "ln_b": jnp.zeros((D,), jnp.float32),
        "head_w": head_w.astype(jnp.bfloat16),                      # (D, 128) padded
        "head_b": jnp.zeros((NUM_CLASSES_PAD,), jnp.float32),
        "blocks": [],
    }
    for _ in range(DEPTH):
        params["blocks"].append({
            "ln1_g": jnp.ones((D,), jnp.float32), "ln1_b": jnp.zeros((D,), jnp.float32),
            "qkv_w": nrm((D, 3 * D), dtype=jnp.bfloat16),
            "qkv_b": jnp.zeros((3 * D,), jnp.float32),
            "proj_w": nrm((D, D), dtype=jnp.bfloat16),
            "proj_b": jnp.zeros((D,), jnp.float32),
            "ln2_g": jnp.ones((D,), jnp.float32), "ln2_b": jnp.zeros((D,), jnp.float32),
            "fc1_w": nrm((D, Md), dtype=jnp.bfloat16),
            "fc1_b": jnp.zeros((Md,), jnp.float32),
            "fc2_w": nrm((Md, D), dtype=jnp.bfloat16),
            "fc2_b": jnp.zeros((D,), jnp.float32),
        })
    return params


# ----------------------------- forward pass -----------------------------
@jax.jit
def model_forward(params, x):
    # layout: x is NCHW (B, 5, H, W), identical to the PyTorch module's input
    B, C, H, W = x.shape
    D = EMBED_DIM
    gh, gw = H // PATCH, W // PATCH
    num_patches = gh * gw

    # patch embedding: Conv2d(5, D, 16, 16, stride 16) == im2col + matmul
    # flatten each patch in (C, ph, pw) order to match the PyTorch conv-weight layout.
    patches = x.reshape(B, C, gh, PATCH, gw, PATCH)
    patches = patches.transpose(0, 2, 4, 1, 3, 5).reshape(B * num_patches, C * PATCH * PATCH)
    tok = fused_linear(patches, params["patch_w"], params["patch_b"])
    tok = tok.reshape(B, num_patches, D)

    # prepend cls token, add positional embedding (pos_drop is identity in eval)
    cls = jnp.broadcast_to(params["cls_token"], (B, 1, D))
    xt = jnp.concatenate([cls, tok], axis=1) + params["pos_embed"]   # (B, S_real, D)
    S_real = num_patches + 1
    S = _round_up(S_real, 8)
    xt = jnp.pad(xt, ((0, 0), (0, S - S_real), (0, 0)))              # zero-pad tokens
    xt2 = xt.reshape(B * S, D)                                       # f32 residual stream

    for blk in params["blocks"]:
        # --- multi-head self-attention (pre-norm); LN1 fused into the qkv matmul ---
        qkv = fused_linear(xt2, blk["qkv_w"], blk["qkv_b"],
                           gamma=blk["ln1_g"], beta=blk["ln1_b"])    # (B*S, 3D)
        a = attention(qkv.reshape(B, S, 3 * D),
                      num_heads=NUM_HEADS, s_real=S_real)            # (B, S, D)
        # proj matmul with the residual add fused in
        xt2 = fused_linear(a.reshape(B * S, D), blk["proj_w"], blk["proj_b"],
                           residual=xt2)
        # --- MLP (pre-norm); LN2 fused into fc1+GELU, residual fused into fc2 ---
        h = fused_linear(xt2, blk["fc1_w"], blk["fc1_b"],
                         gamma=blk["ln2_g"], beta=blk["ln2_b"], activation="gelu")
        xt2 = fused_linear(h, blk["fc2_w"], blk["fc2_b"], residual=xt2)

    # final LayerNorm fused into the (lane-padded) classification head; LN is per-token so
    # applying it only to the cls rows is equivalent to timm's norm -> x[:, 0] -> head.
    cls_rows = xt2.reshape(B, S, D)[:, 0, :]                          # (B, D)
    logits = fused_linear(cls_rows, params["head_w"], params["head_b"],
                          gamma=params["ln_g"], beta=params["ln_b"])  # (B, 128)
    return logits[:, :NUM_CLASSES]


if __name__ == "__main__":
    key = jax.random.PRNGKey(0)
    pkey, xkey = jax.random.split(key)
    params = init_params(pkey)
    x = jax.random.normal(xkey, (2, IN_CHANS, IMG, IMG), dtype=jnp.float32)
    out = model_forward(params, x)
    jax.block_until_ready(out)
    assert out.shape == (2, NUM_CLASSES) and out.dtype == jnp.float32
    print("KERNEL_OK")
</pallas_src>

<mosaic_0001>
module attributes {stable_mosaic.version = 11 : i64} {
  func.func @_fused_linear_kernel(%arg0: i32, %arg1: memref<8x1280xf32, #tpu.memory_space<vmem>>, %arg2: memref<1280x128xbf16, #tpu.memory_space<vmem>>, %arg3: memref<1x128xf32, #tpu.memory_space<vmem>>, %arg4: memref<8x128xf32, #tpu.memory_space<vmem>>) attributes {dimension_semantics = [#tpu.dimension_semantics<parallel>], iteration_bounds = array<i64: 1>, scalar_prefetch = 0 : i64, scratch_operands = 0 : i64, tpu.core_type = #tpu.core_type<tc>, window_params = [{transform_indices = @transform_0, window_bounds = array<i64: 8, 1280>}, {pipeline_mode = #tpu.pipeline_mode<synchronous>, transform_indices = @transform_1, window_bounds = array<i64: 1280, 128>}, {pipeline_mode = #tpu.pipeline_mode<synchronous>, transform_indices = @transform_2, window_bounds = array<i64: 1, 128>}, {transform_indices = @transform_3, window_bounds = array<i64: 8, 128>}]} {
    %c0 = arith.constant 0 : index
    %c0_0 = arith.constant 0 : index
    %0 = vector.load %arg1[%c0, %c0_0] : memref<8x1280xf32, #tpu.memory_space<vmem>>, vector<8x1280xf32>
    %1 = arith.truncf %0 : vector<8x1280xf32> to vector<8x1280xbf16>
    %c0_1 = arith.constant 0 : index
    %c0_2 = arith.constant 0 : index
    %2 = vector.load %arg2[%c0_1, %c0_2] : memref<1280x128xbf16, #tpu.memory_space<vmem>>, vector<1280x128xbf16>
    %cst = arith.constant dense<0.000000e+00> : vector<8x128xf32>
    %3 = tpu.matmul %1, %2, %cst {dimension_numbers = #tpu.dot_dimension_numbers<[1], [0], [0], [1], [0, 0, 1, 1], [], []>} : vector<8x1280xbf16>, vector<1280x128xbf16>, vector<8x128xf32> -> vector<8x128xf32>
    %c0_3 = arith.constant 0 : index
    %c0_4 = arith.constant 0 : index
    %4 = vector.load %arg3[%c0_3, %c0_4] : memref<1x128xf32, #tpu.memory_space<vmem>>, vector<1x128xf32>
    %5 = vector.broadcast %4 : vector<1x128xf32> to vector<8x128xf32>
    %6 = arith.addf %3, %5 : vector<8x128xf32>
    %c0_5 = arith.constant 0 : index
    %c0_6 = arith.constant 0 : index
    %7 = vector.load %arg4[%c0_5, %c0_6] : memref<8x128xf32, #tpu.memory_space<vmem>>, vector<8x128xf32>
    tpu.vector_store %arg4[%c0_5, %c0_6], %6 {strides = array<i32>} : memref<8x128xf32, #tpu.memory_space<vmem>>, vector<8x128xf32>,
    return
  }
  func.func @transform_0(%arg0: i32) -> (i32, i32) {
    %c0_i32 = arith.constant 0 : i32
    %c0_i32_0 = arith.constant 0 : i32
    return %arg0, %c0_i32 : i32, i32
  }
  func.func @transform_1(%arg0: i32) -> (i32, i32) {
    %c0_i32 = arith.constant 0 : i32
    %c0_i32_0 = arith.constant 0 : i32
    %c0_i32_1 = arith.constant 0 : i32
    return %c0_i32, %c0_i32_0 : i32, i32
  }
  func.func @transform_2(%arg0: i32) -> (i32, i32) {
    %c0_i32 = arith.constant 0 : i32
    %c0_i32_0 = arith.constant 0 : i32
    %c0_i32_1 = arith.constant 0 : i32
    return %c0_i32, %c0_i32_0 : i32, i32
  }
  func.func @transform_3(%arg0: i32) -> (i32, i32) {
    %c0_i32 = arith.constant 0 : i32
    %c0_i32_0 = arith.constant 0 : i32
    return %arg0, %c0_i32 : i32, i32
  }
}

module attributes {stable_mosaic.version = 11 : i64} {
  func.func @_fused_linear_kernel(%arg0: i32, %arg1: memref<16x128xf32, #tpu.memory_space<vmem>>, %arg2: memref<1x128xf32, #tpu.memory_space<vmem>>, %arg3: memref<1x128xf32, #tpu.memory_space<vmem>>, %arg4: memref<128x384xbf16, #tpu.memory_space<vmem>>, %arg5: memref<1x384xf32, #tpu.memory_space<vmem>>, %arg6: memref<16x384xf32, #tpu.memory_space<vmem>>) attributes {dimension_semantics = [#tpu.dimension_semantics<parallel>], iteration_bounds = array<i64: 1>, scalar_prefetch = 0 : i64, scratch_operands = 0 : i64, tpu.core_type = #tpu.core_type<tc>, window_params = [{transform_indices = @transform_0, window_bounds = array<i64: 16, 128>}, {pipeline_mode = #tpu.pipeline_mode<synchronous>, transform_indices = @transform_1, window_bounds = array<i64: 1, 128>}, {pipeline_mode = #tpu.pipeline_mode<synchronous>, transform_indices = @transform_2, window_bounds = array<i64: 1, 128>}, {pipeline_mode = #tpu.pipeline_mode<synchronous>, transform_indices = @transform_3, window_bounds = array<i64: 128, 384>}, {pipeline_mode = #tpu.pipeline_mode<synchronous>, transform_indices = @transform_4, window_bounds = array<i64: 1, 384>}, {transform_indices = @transform_5, window_bounds = array<i64: 16, 384>}]} {
    %c0 = arith.constant 0 : index
    %c0_0 = arith.constant 0 : index
    %0 = vector.load %arg1[%c0, %c0_0] : memref<16x128xf32, #tpu.memory_space<vmem>>, vector<16x128xf32>
    %cst = arith.constant dense<0.000000e+00> : vector<16xf32>
    %1 = vector.multi_reduction <add>, %0, %cst [1] : vector<16x128xf32> to vector<16xf32>
    %2 = vector.shape_cast %1 : vector<16xf32> to vector<16x1xf32>
    %cst_1 = arith.constant 1.280000e+02 : f32
    %3 = vector.broadcast %cst_1 : f32 to vector<16x1xf32>
    %4 = arith.divf %2, %3 : vector<16x1xf32>
    %5 = vector.broadcast %4 : vector<16x1xf32> to vector<16x128xf32>
    %6 = arith.subf %0, %5 : vector<16x128xf32>
    %7 = arith.mulf %6, %6 : vector<16x128xf32>
    %cst_2 = arith.constant dense<0.000000e+00> : vector<16xf32>
    %8 = vector.multi_reduction <add>, %7, %cst_2 [1] : vector<16x128xf32> to vector<16xf32>
    %9 = vector.shape_cast %8 : vector<16xf32> to vector<16x1xf32>
    %cst_3 = arith.constant 1.280000e+02 : f32
    %10 = vector.broadcast %cst_3 : f32 to vector<16x1xf32>
    %11 = arith.divf %9, %10 : vector<16x1xf32>
    %12 = vector.broadcast %4 : vector<16x1xf32> to vector<16x128xf32>
    %13 = arith.subf %0, %12 : vector<16x128xf32>
    %cst_4 = arith.constant 9.99999997E-7 : f32
    %14 = vector.broadcast %cst_4 : f32 to vector<16x1xf32>
    %15 = arith.addf %11, %14 : vector<16x1xf32>
    %16 = math.rsqrt %15 : vector<16x1xf32>
    %17 = vector.broadcast %16 : vector<16x1xf32> to vector<16x128xf32>
    %18 = arith.mulf %13, %17 : vector<16x128xf32>
    %c0_5 = arith.constant 0 : index
    %c0_6 = arith.constant 0 : index
    %19 = vector.load %arg2[%c0_5, %c0_6] : memref<1x128xf32, #tpu.memory_space<vmem>>, vector<1x128xf32>
    %20 = vector.broadcast %19 : vector<1x128xf32> to vector<16x128xf32>
    %21 = arith.mulf %18, %20 : vector<16x128xf32>
    %c0_7 = arith.constant 0 : index
    %c0_8 = arith.constant 0 : index
    %22 = vector.load %arg3[%c0_7, %c0_8] : memref<1x128xf32, #tpu.memory_space<vmem>>, vector<1x128xf32>
    %23 = vector.broadcast %22 : vector<1x128xf32> to vector<16x128xf32>
    %24 = arith.addf %21, %23 : vector<16x128xf32>
    %25 = arith.truncf %24 : vector<16x128xf32> to vector<16x128xbf16>
    %c0_9 = arith.constant 0 : index
    %c0_10 = arith.constant 0 : index
    %26 = vector.load %arg4[%c0_9, %c0_10] : memref<128x384xbf16, #tpu.memory_space<vmem>>, vector<128x384xbf16>
    %cst_11 = arith.constant dense<0.000000e+00> : vector<16x384xf32>
    %27 = tpu.matmul %25, %26, %cst_11 {dimension_numbers = #tpu.dot_dimension_numbers<[1], [0], [0], [1], [0, 0, 1, 1], [], []>} : vector<16x128xbf16>, vector<128x384xbf16>, vector<16x384xf32> -> vector<16x384xf32>
    %c0_12 = arith.constant 0 : index
    %c0_13 = arith.constant 0 : index
    %28 = vector.load %arg5[%c0_12, %c0_13] : memref<1x384xf32, #tpu.memory_space<vmem>>, vector<1x384xf32>
    %29 = vector.broadcast %28 : vector<1x384xf32> to vector<16x384xf32>
    %30 = arith.addf %27, %29 : vector<16x384xf32>
    %c0_14 = arith.constant 0 : index
    %c0_15 = arith.constant 0 : index
    %31 = vector.load %arg6[%c0_14, %c0_15] : memref<16x384xf32, #tpu.memory_space<vmem>>, vector<16x384xf32>
    tpu.vector_store %arg6[%c0_14, %c0_15], %30 {strides = array<i32>} : memref<16x384xf32, #tpu.memory_space<vmem>>, vector<16x384xf32>,
    return
  }
  func.func @transform_0(%arg0: i32) -> (i32, i32) {
    %c0_i32 = arith.constant 0 : i32
    %c0_i32_0 = arith.constant 0 : i32
    return %arg0, %c0_i32 : i32, i32
  }
  func.func @transform_1(%arg0: i32) -> (i32, i32) {
    %c0_i32 = arith.constant 0 : i32
    %c0_i32_0 = arith.constant 0 : i32
    %c0_i32_1 = arith.constant 0 : i32
    return %c0_i32, %c0_i32_0 : i32, i32
  }
  func.func @transform_2(%arg0: i32) -> (i32, i32) {
    %c0_i32 = arith.constant 0 : i32
    %c0_i32_0 = arith.constant 0 : i32
    %c0_i32_1 = arith.constant 0 : i32
    return %c0_i32, %c0_i32_0 : i32, i32
  }
  func.func @transform_3(%arg0: i32) -> (i32, i32) {
    %c0_i32 = arith.constant 0 : i32
    %c0_i32_0 = arith.constant 0 : i32
    %c0_i32_1 = arith.constant 0 : i32
    return %c0_i32, %c0_i32_0 : i32, i32
  }
  func.func @transform_4(%arg0: i32) -> (i32, i32) {
    %c0_i32 = arith.constant 0 : i32
    %c0_i32_0 = arith.constant 0 : i32
    %c0_i32_1 = arith.constant 0 : i32
    return %c0_i32, %c0_i32_0 : i32, i32
  }
  func.func @transform_5(%arg0: i32) -> (i32, i32) {
    %c0_i32 = arith.constant 0 : i32
    %c0_i32_0 = arith.constant 0 : i32
    return %arg0, %c0_i32 : i32, i32
  }
}

module attributes {stable_mosaic.version = 11 : i64} {
  func.func @_fused_linear_kernel(%arg0: i32, %arg1: memref<16x128xf32, #tpu.memory_space<vmem>>, %arg2: memref<128x128xbf16, #tpu.memory_space<vmem>>, %arg3: memref<1x128xf32, #tpu.memory_space<vmem>>, %arg4: memref<16x128xf32, #tpu.memory_space<vmem>>, %arg5: memref<16x128xf32, #tpu.memory_space<vmem>>) attributes {dimension_semantics = [#tpu.dimension_semantics<parallel>], iteration_bounds = array<i64: 1>, scalar_prefetch = 0 : i64, scratch_operands = 0 : i64, tpu.core_type = #tpu.core_type<tc>, window_params = [{transform_indices = @transform_0, window_bounds = array<i64: 16, 128>}, {pipeline_mode = #tpu.pipeline_mode<synchronous>, transform_indices = @transform_1, window_bounds = array<i64: 128, 128>}, {pipeline_mode = #tpu.pipeline_mode<synchronous>, transform_indices = @transform_2, window_bounds = array<i64: 1, 128>}, {transform_indices = @transform_3, window_bounds = array<i64: 16, 128>}, {transform_indices = @transform_4, window_bounds = array<i64: 16, 128>}]} {
    %c0 = arith.constant 0 : index
    %c0_0 = arith.constant 0 : index
    %0 = vector.load %arg1[%c0, %c0_0] : memref<16x128xf32, #tpu.memory_space<vmem>>, vector<16x128xf32>
    %1 = arith.truncf %0 : vector<16x128xf32> to vector<16x128xbf16>
    %c0_1 = arith.constant 0 : index
    %c0_2 = arith.constant 0 : index
    %2 = vector.load %arg2[%c0_1, %c0_2] : memref<128x128xbf16, #tpu.memory_space<vmem>>, vector<128x128xbf16>
    %cst = arith.constant dense<0.000000e+00> : vector<16x128xf32>
    %3 = tpu.matmul %1, %2, %cst {dimension_numbers = #tpu.dot_dimension_numbers<[1], [0], [0], [1], [0, 0, 1, 1], [], []>} : vector<16x128xbf16>, vector<128x128xbf16>, vector<16x128xf32> -> vector<16x128xf32>
    %c0_3 = arith.constant 0 : index
    %c0_4 = arith.constant 0 : index
    %4 = vector.load %arg3[%c0_3, %c0_4] : memref<1x128xf32, #tpu.memory_space<vmem>>, vector<1x128xf32>
    %5 = vector.broadcast %4 : vector<1x128xf32> to vector<16x128xf32>
    %6 = arith.addf %3, %5 : vector<16x128xf32>
    %c0_5 = arith.constant 0 : index
    %c0_6 = arith.constant 0 : index
    %7 = vector.load %arg4[%c0_5, %c0_6] : memref<16x128xf32, #tpu.memory_space<vmem>>, vector<16x128xf32>
    %8 = arith.addf %6, %7 : vector<16x128xf32>
    %c0_7 = arith.constant 0 : index
    %c0_8 = arith.constant 0 : index
    %9 = vector.load %arg5[%c0_7, %c0_8] : memref<16x128xf32, #tpu.memory_space<vmem>>, vector<16x128xf32>
    tpu.vector_store %arg5[%c0_7, %c0_8], %8 {strides = array<i32>} : memref<16x128xf32, #tpu.memory_space<vmem>>, vector<16x128xf32>,
    return
  }
  func.func @transform_0(%arg0: i32) -> (i32, i32) {
    %c0_i32 = arith.constant 0 : i32
    %c0_i32_0 = arith.constant 0 : i32
    return %arg0, %c0_i32 : i32, i32
  }
  func.func @transform_1(%arg0: i32) -> (i32, i32) {
    %c0_i32 = arith.constant 0 : i32
    %c0_i32_0 = arith.constant 0 : i32
    %c0_i32_1 = arith.constant 0 : i32
    return %c0_i32, %c0_i32_0 : i32, i32
  }
  func.func @transform_2(%arg0: i32) -> (i32, i32) {
    %c0_i32 = arith.constant 0 : i32
    %c0_i32_0 = arith.constant 0 : i32
    %c0_i32_1 = arith.constant 0 : i32
    return %c0_i32, %c0_i32_0 : i32, i32
  }
  func.func @transform_3(%arg0: i32) -> (i32, i32) {
    %c0_i32 = arith.constant 0 : i32
    %c0_i32_0 = arith.constant 0 : i32
    return %arg0, %c0_i32 : i32, i32
  }
  func.func @transform_4(%arg0: i32) -> (i32, i32) {
    %c0_i32 = arith.constant 0 : i32
    %c0_i32_0 = arith.constant 0 : i32
    return %arg0, %c0_i32 : i32, i32
  }
}

module attributes {stable_mosaic.version = 11 : i64} {
  func.func @_attention_kernel(%arg0: i32, %arg1: memref<1x8x384xf32, #tpu.memory_space<vmem>>, %arg2: memref<1x8x128xf32, #tpu.memory_space<vmem>>) attributes {dimension_semantics = [#tpu.dimension_semantics<parallel>], iteration_bounds = array<i64: 2>, scalar_prefetch = 0 : i64, scratch_operands = 0 : i64, tpu.core_type = #tpu.core_type<tc>, window_params = [{transform_indices = @transform_0, window_bounds = array<i64: 1, 8, 384>}, {transform_indices = @transform_1, window_bounds = array<i64: 1, 8, 128>}]} {
    %c0 = arith.constant 0 : index
    %c0_0 = arith.constant 0 : index
    %c0_1 = arith.constant 0 : index
    %0 = vector.load %arg1[%c0, %c0_0, %c0_1] : memref<1x8x384xf32, #tpu.memory_space<vmem>>, vector<1x8x384xf32>
    %1 = vector.shape_cast %0 : vector<1x8x384xf32> to vector<8x384xf32>
    %2 = tpu.iota {dimensions = array<i32: 1>} : vector<1x8xi32>
    %c5_i32 = arith.constant 5 : i32
    %3 = vector.broadcast %c5_i32 : i32 to vector<1x8xi32>
    %4 = arith.cmpi slt, %2, %3 : vector<1x8xi32>
    %5 = vector.extract_strided_slice %1 {offsets = [0, 0], sizes = [8, 32], strides = [1, 1]} : vector<8x384xf32> to vector<8x32xf32>
    %6 = vector.extract_strided_slice %1 {offsets = [0, 128], sizes = [8, 32], strides = [1, 1]} : vector<8x384xf32> to vector<8x32xf32>
    %7 = vector.extract_strided_slice %1 {offsets = [0, 256], sizes = [8, 32], strides = [1, 1]} : vector<8x384xf32> to vector<8x32xf32>
    %8 = arith.truncf %5 : vector<8x32xf32> to vector<8x32xbf16>
    %9 = arith.truncf %6 : vector<8x32xf32> to vector<8x32xbf16>
    %cst = arith.constant dense<0.000000e+00> : vector<8x8xf32>
    %10 = tpu.matmul %8, %9, %cst {dimension_numbers = #tpu.dot_dimension_numbers<[1], [1], [0], [0], [0, 0, 1, 0], [], []>} : vector<8x32xbf16>, vector<8x32xbf16>, vector<8x8xf32> -> vector<8x8xf32>
    %cst_2 = arith.constant 0.176776692 : f32
    %11 = vector.broadcast %cst_2 : f32 to vector<8x8xf32>
    %12 = arith.mulf %10, %11 : vector<8x8xf32>
    %cst_3 = arith.constant -1.000000e+30 : f32
    %13 = vector.shape_cast %4 : vector<1x8xi1> to vector<1x8xi1>
    %14 = vector.broadcast %13 : vector<1x8xi1> to vector<8x8xi1>
    %15 = vector.broadcast %cst_3 : f32 to vector<8x8xf32>
    %16 = arith.select %14, %12, %15 : vector<8x8xi1>, vector<8x8xf32>
    %cst_4 = arith.constant dense<0xFF800000> : vector<8xf32>
    %17 = vector.multi_reduction <maximumf>, %16, %cst_4 [1] : vector<8x8xf32> to vector<8xf32>
    %18 = vector.shape_cast %17 : vector<8xf32> to vector<8x1xf32>
    %19 = vector.broadcast %18 : vector<8x1xf32> to vector<8x8xf32>
    %20 = arith.subf %16, %19 : vector<8x8xf32>
    %21 = math.exp %20 : vector<8x8xf32>
    %cst_5 = arith.constant dense<0.000000e+00> : vector<8xf32>
    %22 = vector.multi_reduction <add>, %21, %cst_5 [1] : vector<8x8xf32> to vector<8xf32>
    %23 = vector.shape_cast %22 : vector<8xf32> to vector<8x1xf32>
    %24 = tpu.reciprocal %23 {approx = true} : vector<8x1xf32> -> vector<8x1xf32>
    %25 = vector.broadcast %24 : vector<8x1xf32> to vector<8x8xf32>
    %26 = arith.mulf %21, %25 : vector<8x8xf32>
    %27 = arith.truncf %26 : vector<8x8xf32> to vector<8x8xbf16>
    %28 = arith.truncf %7 : vector<8x32xf32> to vector<8x32xbf16>
    %cst_6 = arith.constant dense<0.000000e+00> : vector<8x32xf32>
    %29 = tpu.matmul %27, %28, %cst_6 {dimension_numbers = #tpu.dot_dimension_numbers<[1], [0], [0], [1], [0, 0, 1, 1], [], []>} : vector<8x8xbf16>, vector<8x32xbf16>, vector<8x32xf32> -> vector<8x32xf32>
    %30 = vector.extract_strided_slice %1 {offsets = [0, 32], sizes = [8, 32], strides = [1, 1]} : vector<8x384xf32> to vector<8x32xf32>
    %31 = vector.extract_strided_slice %1 {offsets = [0, 160], sizes = [8, 32], strides = [1, 1]} : vector<8x384xf32> to vector<8x32xf32>
    %32 = vector.extract_strided_slice %1 {offsets = [0, 288], sizes = [8, 32], strides = [1, 1]} : vector<8x384xf32> to vector<8x32xf32>
    %33 = arith.truncf %30 : vector<8x32xf32> to vector<8x32xbf16>
    %34 = arith.truncf %31 : vector<8x32xf32> to vector<8x32xbf16>
    %cst_7 = arith.constant dense<0.000000e+00> : vector<8x8xf32>
    %35 = tpu.matmul %33, %34, %cst_7 {dimension_numbers = #tpu.dot_dimension_numbers<[1], [1], [0], [0], [0, 0, 1, 0], [], []>} : vector<8x32xbf16>, vector<8x32xbf16>, vector<8x8xf32> -> vector<8x8xf32>
    %cst_8 = arith.constant 0.176776692 : f32
    %36 = vector.broadcast %cst_8 : f32 to vector<8x8xf32>
    %37 = arith.mulf %35, %36 : vector<8x8xf32>
    %cst_9 = arith.constant -1.000000e+30 : f32
    %38 = vector.shape_cast %4 : vector<1x8xi1> to vector<1x8xi1>
    %39 = vector.broadcast %38 : vector<1x8xi1> to vector<8x8xi1>
    %40 = vector.broadcast %cst_9 : f32 to vector<8x8xf32>
    %41 = arith.select %39, %37, %40 : vector<8x8xi1>, vector<8x8xf32>
    %cst_10 = arith.constant dense<0xFF800000> : vector<8xf32>
    %42 = vector.multi_reduction <maximumf>, %41, %cst_10 [1] : vector<8x8xf32> to vector<8xf32>
    %43 = vector.shape_cast %42 : vector<8xf32> to vector<8x1xf32>
    %44 = vector.broadcast %43 : vector<8x1xf32> to vector<8x8xf32>
    %45 = arith.subf %41, %44 : vector<8x8xf32>
    %46 = math.exp %45 : vector<8x8xf32>
    %cst_11 = arith.constant dense<0.000000e+00> : vector<8xf32>
    %47 = vector.multi_reduction <add>, %46, %cst_11 [1] : vector<8x8xf32> to vector<8xf32>
    %48 = vector.shape_cast %47 : vector<8xf32> to vector<8x1xf32>
    %49 = tpu.reciprocal %48 {approx = true} : vector<8x1xf32> -> vector<8x1xf32>
    %50 = vector.broadcast %49 : vector<8x1xf32> to vector<8x8xf32>
    %51 = arith.mulf %46, %50 : vector<8x8xf32>
    %52 = arith.truncf %51 : vector<8x8xf32> to vector<8x8xbf16>
    %53 = arith.truncf %32 : vector<8x32xf32> to vector<8x32xbf16>
    %cst_12 = arith.constant dense<0.000000e+00> : vector<8x32xf32>
    %54 = tpu.matmul %52, %53, %cst_12 {dimension_numbers = #tpu.dot_dimension_numbers<[1], [0], [0], [1], [0, 0, 1, 1], [], []>} : vector<8x8xbf16>, vector<8x32xbf16>, vector<8x32xf32> -> vector<8x32xf32>
    %55 = vector.extract_strided_slice %1 {offsets = [0, 64], sizes = [8, 32], strides = [1, 1]} : vector<8x384xf32> to vector<8x32xf32>
    %56 = vector.extract_strided_slice %1 {offsets = [0, 192], sizes = [8, 32], strides = [1, 1]} : vector<8x384xf32> to vector<8x32xf32>
    %57 = vector.extract_strided_slice %1 {offsets = [0, 320], sizes = [8, 32], strides = [1, 1]} : vector<8x384xf32> to vector<8x32xf32>
    %58 = arith.truncf %55 : vector<8x32xf32> to vector<8x32xbf16>
    %59 = arith.truncf %56 : vector<8x32xf32> to vector<8x32xbf16>
    %cst_13 = arith.constant dense<0.000000e+00> : vector<8x8xf32>
    %60 = tpu.matmul %58, %59, %cst_13 {dimension_numbers = #tpu.dot_dimension_numbers<[1], [1], [0], [0], [0, 0, 1, 0], [], []>} : vector<8x32xbf16>, vector<8x32xbf16>, vector<8x8xf32> -> vector<8x8xf32>
    %cst_14 = arith.constant 0.176776692 : f32
    %61 = vector.broadcast %cst_14 : f32 to vector<8x8xf32>
    %62 = arith.mulf %60, %61 : vector<8x8xf32>
    %cst_15 = arith.constant -1.000000e+30 : f32
    %63 = vector.shape_cast %4 : vector<1x8xi1> to vector<1x8xi1>
    %64 = vector.broadcast %63 : vector<1x8xi1> to vector<8x8xi1>
    %65 = vector.broadcast %cst_15 : f32 to vector<8x8xf32>
    %66 = arith.select %64, %62, %65 : vector<8x8xi1>, vector<8x8xf32>
    %cst_16 = arith.constant dense<0xFF800000> : vector<8xf32>
    %67 = vector.multi_reduction <maximumf>, %66, %cst_16 [1] : vector<8x8xf32> to vector<8xf32>
    %68 = vector.shape_cast %67 : vector<8xf32> to vector<8x1xf32>
    %69 = vector.broadcast %68 : vector<8x1xf32> to vector<8x8xf32>
    %70 = arith.subf %66, %69 : vector<8x8xf32>
    %71 = math.exp %70 : vector<8x8xf32>
    %cst_17 = arith.constant dense<0.000000e+00> : vector<8xf32>
    %72 = vector.multi_reduction <add>, %71, %cst_17 [1] : vector<8x8xf32> to vector<8xf32>
    %73 = vector.shape_cast %72 : vector<8xf32> to vector<8x1xf32>
    %74 = tpu.reciprocal %73 {approx = true} : vector<8x1xf32> -> vector<8x1xf32>
    %75 = vector.broadcast %74 : vector<8x1xf32> to vector<8x8xf32>
    %76 = arith.mulf %71, %75 : vector<8x8xf32>
    %77 = arith.truncf %76 : vector<8x8xf32> to vector<8x8xbf16>
    %78 = arith.truncf %57 : vector<8x32xf32> to vector<8x32xbf16>
    %cst_18 = arith.constant dense<0.000000e+00> : vector<8x32xf32>
    %79 = tpu.matmul %77, %78, %cst_18 {dimension_numbers = #tpu.dot_dimension_numbers<[1], [0], [0], [1], [0, 0, 1, 1], [], []>} : vector<8x8xbf16>, vector<8x32xbf16>, vector<8x32xf32> -> vector<8x32xf32>
    %80 = vector.extract_strided_slice %1 {offsets = [0, 96], sizes = [8, 32], strides = [1, 1]} : vector<8x384xf32> to vector<8x32xf32>
    %81 = vector.extract_strided_slice %1 {offsets = [0, 224], sizes = [8, 32], strides = [1, 1]} : vector<8x384xf32> to vector<8x32xf32>
    %82 = vector.extract_strided_slice %1 {offsets = [0, 352], sizes = [8, 32], strides = [1, 1]} : vector<8x384xf32> to vector<8x32xf32>
    %83 = arith.truncf %80 : vector<8x32xf32> to vector<8x32xbf16>
    %84 = arith.truncf %81 : vector<8x32xf32> to vector<8x32xbf16>
    %cst_19 = arith.constant dense<0.000000e+00> : vector<8x8xf32>
    %85 = tpu.matmul %83, %84, %cst_19 {dimension_numbers = #tpu.dot_dimension_numbers<[1], [1], [0], [0], [0, 0, 1, 0], [], []>} : vector<8x32xbf16>, vector<8x32xbf16>, vector<8x8xf32> -> vector<8x8xf32>
    %cst_20 = arith.constant 0.176776692 : f32
    %86 = vector.broadcast %cst_20 : f32 to vector<8x8xf32>
    %87 = arith.mulf %85, %86 : vector<8x8xf32>
    %cst_21 = arith.constant -1.000000e+30 : f32
    %88 = vector.shape_cast %4 : vector<1x8xi1> to vector<1x8xi1>
    %89 = vector.broadcast %88 : vector<1x8xi1> to vector<8x8xi1>
    %90 = vector.broadcast %cst_21 : f32 to vector<8x8xf32>
    %91 = arith.select %89, %87, %90 : vector<8x8xi1>, vector<8x8xf32>
    %cst_22 = arith.constant dense<0xFF800000> : vector<8xf32>
    %92 = vector.multi_reduction <maximumf>, %91, %cst_22 [1] : vector<8x8xf32> to vector<8xf32>
    %93 = vector.shape_cast %92 : vector<8xf32> to vector<8x1xf32>
    %94 = vector.broadcast %93 : vector<8x1xf32> to vector<8x8xf32>
    %95 = arith.subf %91, %94 : vector<8x8xf32>
    %96 = math.exp %95 : vector<8x8xf32>
    %cst_23 = arith.constant dense<0.000000e+00> : vector<8xf32>
    %97 = vector.multi_reduction <add>, %96, %cst_23 [1] : vector<8x8xf32> to vector<8xf32>
    %98 = vector.shape_cast %97 : vector<8xf32> to vector<8x1xf32>
    %99 = tpu.reciprocal %98 {approx = true} : vector<8x1xf32> -> vector<8x1xf32>
    %100 = vector.broadcast %99 : vector<8x1xf32> to vector<8x8xf32>
    %101 = arith.mulf %96, %100 : vector<8x8xf32>
    %102 = arith.truncf %101 : vector<8x8xf32> to vector<8x8xbf16>
    %103 = arith.truncf %82 : vector<8x32xf32> to vector<8x32xbf16>
    %cst_24 = arith.constant dense<0.000000e+00> : vector<8x32xf32>
    %104 = tpu.matmul %102, %103, %cst_24 {dimension_numbers = #tpu.dot_dimension_numbers<[1], [0], [0], [1], [0, 0, 1, 1], [], []>} : vector<8x8xbf16>, vector<8x32xbf16>, vector<8x32xf32> -> vector<8x32xf32>
    %105 = tpu.concatenate %29, %54, %79, %104 in 1 : vector<8x32xf32>, vector<8x32xf32>, vector<8x32xf32>, vector<8x32xf32> -> vector<8x128xf32>
    %c0_25 = arith.constant 0 : index
    %c0_26 = arith.constant 0 : index
    %c0_27 = arith.constant 0 : index
    %106 = vector.load %arg2[%c0_25, %c0_26, %c0_27] : memref<1x8x128xf32, #tpu.memory_space<vmem>>, vector<1x8x128xf32>
    %107 = vector.shape_cast %106 : vector<1x8x128xf32> to vector<8x128xf32>
    %108 = vector.shape_cast %105 : vector<8x128xf32> to vector<1x8x128xf32>
    tpu.vector_store %arg2[%c0_25, %c0_26, %c0_27], %108 {strides = array<i32>} : memref<1x8x128xf32, #tpu.memory_space<vmem>>, vector<1x8x128xf32>,
    return
  }
  func.func @transform_0(%arg0: i32) -> (i32, i32, i32) {
    %c0_i32 = arith.constant 0 : i32
    %c0_i32_0 = arith.constant 0 : i32
    %c0_i32_1 = arith.constant 0 : i32
    return %arg0, %c0_i32, %c0_i32_0 : i32, i32, i32
  }
  func.func @transform_1(%arg0: i32) -> (i32, i32, i32) {
    %c0_i32 = arith.constant 0 : i32
    %c0_i32_0 = arith.constant 0 : i32
    %c0_i32_1 = arith.constant 0 : i32
    return %arg0, %c0_i32, %c0_i32_0 : i32, i32, i32
  }
}

module attributes {stable_mosaic.version = 11 : i64} {
  func.func @_fused_linear_kernel(%arg0: i32, %arg1: memref<16x128xf32, #tpu.memory_space<vmem>>, %arg2: memref<1x128xf32, #tpu.memory_space<vmem>>, %arg3: memref<1x128xf32, #tpu.memory_space<vmem>>, %arg4: memref<128x512xbf16, #tpu.memory_space<vmem>>, %arg5: memref<1x512xf32, #tpu.memory_space<vmem>>, %arg6: memref<16x512xf32, #tpu.memory_space<vmem>>) attributes {dimension_semantics = [#tpu.dimension_semantics<parallel>], iteration_bounds = array<i64: 1>, scalar_prefetch = 0 : i64, scratch_operands = 0 : i64, tpu.core_type = #tpu.core_type<tc>, window_params = [{transform_indices = @transform_0, window_bounds = array<i64: 16, 128>}, {pipeline_mode = #tpu.pipeline_mode<synchronous>, transform_indices = @transform_1, window_bounds = array<i64: 1, 128>}, {pipeline_mode = #tpu.pipeline_mode<synchronous>, transform_indices = @transform_2, window_bounds = array<i64: 1, 128>}, {pipeline_mode = #tpu.pipeline_mode<synchronous>, transform_indices = @transform_3, window_bounds = array<i64: 128, 512>}, {pipeline_mode = #tpu.pipeline_mode<synchronous>, transform_indices = @transform_4, window_bounds = array<i64: 1, 512>}, {transform_indices = @transform_5, window_bounds = array<i64: 16, 512>}]} {
    %c0 = arith.constant 0 : index
    %c0_0 = arith.constant 0 : index
    %0 = vector.load %arg1[%c0, %c0_0] : memref<16x128xf32, #tpu.memory_space<vmem>>, vector<16x128xf32>
    %cst = arith.constant dense<0.000000e+00> : vector<16xf32>
    %1 = vector.multi_reduction <add>, %0, %cst [1] : vector<16x128xf32> to vector<16xf32>
    %2 = vector.shape_cast %1 : vector<16xf32> to vector<16x1xf32>
    %cst_1 = arith.constant 1.280000e+02 : f32
    %3 = vector.broadcast %cst_1 : f32 to vector<16x1xf32>
    %4 = arith.divf %2, %3 : vector<16x1xf32>
    %5 = vector.broadcast %4 : vector<16x1xf32> to vector<16x128xf32>
    %6 = arith.subf %0, %5 : vector<16x128xf32>
    %7 = arith.mulf %6, %6 : vector<16x128xf32>
    %cst_2 = arith.constant dense<0.000000e+00> : vector<16xf32>
    %8 = vector.multi_reduction <add>, %7, %cst_2 [1] : vector<16x128xf32> to vector<16xf32>
    %9 = vector.shape_cast %8 : vector<16xf32> to vector<16x1xf32>
    %cst_3 = arith.constant 1.280000e+02 : f32
    %10 = vector.broadcast %cst_3 : f32 to vector<16x1xf32>
    %11 = arith.divf %9, %10 : vector<16x1xf32>
    %12 = vector.broadcast %4 : vector<16x1xf32> to vector<16x128xf32>
    %13 = arith.subf %0, %12 : vector<16x128xf32>
    %cst_4 = arith.constant 9.99999997E-7 : f32
    %14 = vector.broadcast %cst_4 : f32 to vector<16x1xf32>
    %15 = arith.addf %11, %14 : vector<16x1xf32>
    %16 = math.rsqrt %15 : vector<16x1xf32>
    %17 = vector.broadcast %16 : vector<16x1xf32> to vector<16x128xf32>
    %18 = arith.mulf %13, %17 : vector<16x128xf32>
    %c0_5 = arith.constant 0 : index
    %c0_6 = arith.constant 0 : index
    %19 = vector.load %arg2[%c0_5, %c0_6] : memref<1x128xf32, #tpu.memory_space<vmem>>, vector<1x128xf32>
    %20 = vector.broadcast %19 : vector<1x128xf32> to vector<16x128xf32>
    %21 = arith.mulf %18, %20 : vector<16x128xf32>
    %c0_7 = arith.constant 0 : index
    %c0_8 = arith.constant 0 : index
    %22 = vector.load %arg3[%c0_7, %c0_8] : memref<1x128xf32, #tpu.memory_space<vmem>>, vector<1x128xf32>
    %23 = vector.broadcast %22 : vector<1x128xf32> to vector<16x128xf32>
    %24 = arith.addf %21, %23 : vector<16x128xf32>
    %25 = arith.truncf %24 : vector<16x128xf32> to vector<16x128xbf16>
    %c0_9 = arith.constant 0 : index
    %c0_10 = arith.constant 0 : index
    %26 = vector.load %arg4[%c0_9, %c0_10] : memref<128x512xbf16, #tpu.memory_space<vmem>>, vector<128x512xbf16>
    %cst_11 = arith.constant dense<0.000000e+00> : vector<16x512xf32>
    %27 = tpu.matmul %25, %26, %cst_11 {dimension_numbers = #tpu.dot_dimension_numbers<[1], [0], [0], [1], [0, 0, 1, 1], [], []>} : vector<16x128xbf16>, vector<128x512xbf16>, vector<16x512xf32> -> vector<16x512xf32>
    %c0_12 = arith.constant 0 : index
    %c0_13 = arith.constant 0 : index
    %28 = vector.load %arg5[%c0_12, %c0_13] : memref<1x512xf32, #tpu.memory_space<vmem>>, vector<1x512xf32>
    %29 = vector.broadcast %28 : vector<1x512xf32> to vector<16x512xf32>
    %30 = arith.addf %27, %29 : vector<16x512xf32>
    %cst_14 = arith.constant 5.000000e-01 : f32
    %31 = vector.broadcast %cst_14 : f32 to vector<16x512xf32>
    %32 = arith.mulf %31, %30 : vector<16x512xf32>
    %cst_15 = arith.constant 0.707106769 : f32
    %33 = vector.broadcast %cst_15 : f32 to vector<16x512xf32>
    %34 = arith.mulf %30, %33 : vector<16x512xf32>
    %35 = math.erf %34 : vector<16x512xf32>
    %cst_16 = arith.constant 1.000000e+00 : f32
    %36 = vector.broadcast %cst_16 : f32 to vector<16x512xf32>
    %37 = arith.addf %36, %35 : vector<16x512xf32>
    %38 = arith.mulf %32, %37 : vector<16x512xf32>
    %c0_17 = arith.constant 0 : index
    %c0_18 = arith.constant 0 : index
    %39 = vector.load %arg6[%c0_17, %c0_18] : memref<16x512xf32, #tpu.memory_space<vmem>>, vector<16x512xf32>
    tpu.vector_store %arg6[%c0_17, %c0_18], %38 {strides = array<i32>} : memref<16x512xf32, #tpu.memory_space<vmem>>, vector<16x512xf32>,
    return
  }
  func.func @transform_0(%arg0: i32) -> (i32, i32) {
    %c0_i32 = arith.constant 0 : i32
    %c0_i32_0 = arith.constant 0 : i32
    return %arg0, %c0_i32 : i32, i32
  }
  func.func @transform_1(%arg0: i32) -> (i32, i32) {
    %c0_i32 = arith.constant 0 : i32
    %c0_i32_0 = arith.constant 0 : i32
    %c0_i32_1 = arith.constant 0 : i32
    return %c0_i32, %c0_i32_0 : i32, i32
  }
  func.func @transform_2(%arg0: i32) -> (i32, i32) {
    %c0_i32 = arith.constant 0 : i32
    %c0_i32_0 = arith.constant 0 : i32
    %c0_i32_1 = arith.constant 0 : i32
    return %c0_i32, %c0_i32_0 : i32, i32
  }
  func.func @transform_3(%arg0: i32) -> (i32, i32) {
    %c0_i32 = arith.constant 0 : i32
    %c0_i32_0 = arith.constant 0 : i32
    %c0_i32_1 = arith.constant 0 : i32
    return %c0_i32, %c0_i32_0 : i32, i32
  }
  func.func @transform_4(%arg0: i32) -> (i32, i32) {
    %c0_i32 = arith.constant 0 : i32
    %c0_i32_0 = arith.constant 0 : i32
    %c0_i32_1 = arith.constant 0 : i32
    return %c0_i32, %c0_i32_0 : i32, i32
  }
  func.func @transform_5(%arg0: i32) -> (i32, i32) {
    %c0_i32 = arith.constant 0 : i32
    %c0_i32_0 = arith.constant 0 : i32
    return %arg0, %c0_i32 : i32, i32
  }
}

module attributes {stable_mosaic.version = 11 : i64} {
  func.func @_fused_linear_kernel(%arg0: i32, %arg1: memref<16x512xf32, #tpu.memory_space<vmem>>, %arg2: memref<512x128xbf16, #tpu.memory_space<vmem>>, %arg3: memref<1x128xf32, #tpu.memory_space<vmem>>, %arg4: memref<16x128xf32, #tpu.memory_space<vmem>>, %arg5: memref<16x128xf32, #tpu.memory_space<vmem>>) attributes {dimension_semantics = [#tpu.dimension_semantics<parallel>], iteration_bounds = array<i64: 1>, scalar_prefetch = 0 : i64, scratch_operands = 0 : i64, tpu.core_type = #tpu.core_type<tc>, window_params = [{transform_indices = @transform_0, window_bounds = array<i64: 16, 512>}, {pipeline_mode = #tpu.pipeline_mode<synchronous>, transform_indices = @transform_1, window_bounds = array<i64: 512, 128>}, {pipeline_mode = #tpu.pipeline_mode<synchronous>, transform_indices = @transform_2, window_bounds = array<i64: 1, 128>}, {transform_indices = @transform_3, window_bounds = array<i64: 16, 128>}, {transform_indices = @transform_4, window_bounds = array<i64: 16, 128>}]} {
    %c0 = arith.constant 0 : index
    %c0_0 = arith.constant 0 : index
    %0 = vector.load %arg1[%c0, %c0_0] : memref<16x512xf32, #tpu.memory_space<vmem>>, vector<16x512xf32>
    %1 = arith.truncf %0 : vector<16x512xf32> to vector<16x512xbf16>
    %c0_1 = arith.constant 0 : index
    %c0_2 = arith.constant 0 : index
    %2 = vector.load %arg2[%c0_1, %c0_2] : memref<512x128xbf16, #tpu.memory_space<vmem>>, vector<512x128xbf16>
    %cst = arith.constant dense<0.000000e+00> : vector<16x128xf32>
    %3 = tpu.matmul %1, %2, %cst {dimension_numbers = #tpu.dot_dimension_numbers<[1], [0], [0], [1], [0, 0, 1, 1], [], []>} : vector<16x512xbf16>, vector<512x128xbf16>, vector<16x128xf32> -> vector<16x128xf32>
    %c0_3 = arith.constant 0 : index
    %c0_4 = arith.constant 0 : index
    %4 = vector.load %arg3[%c0_3, %c0_4] : memref<1x128xf32, #tpu.memory_space<vmem>>, vector<1x128xf32>
    %5 = vector.broadcast %4 : vector<1x128xf32> to vector<16x128xf32>
    %6 = arith.addf %3, %5 : vector<16x128xf32>
    %c0_5 = arith.constant 0 : index
    %c0_6 = arith.constant 0 : index
    %7 = vector.load %arg4[%c0_5, %c0_6] : memref<16x128xf32, #tpu.memory_space<vmem>>, vector<16x128xf32>
    %8 = arith.addf %6, %7 : vector<16x128xf32>
    %c0_7 = arith.constant 0 : index
    %c0_8 = arith.constant 0 : index
    %9 = vector.load %arg5[%c0_7, %c0_8] : memref<16x128xf32, #tpu.memory_space<vmem>>, vector<16x128xf32>
    tpu.vector_store %arg5[%c0_7, %c0_8], %8 {strides = array<i32>} : memref<16x128xf32, #tpu.memory_space<vmem>>, vector<16x128xf32>,
    return
  }
  func.func @transform_0(%arg0: i32) -> (i32, i32) {
    %c0_i32 = arith.constant 0 : i32
    %c0_i32_0 = arith.constant 0 : i32
    return %arg0, %c0_i32 : i32, i32
  }
  func.func @transform_1(%arg0: i32) -> (i32, i32) {
    %c0_i32 = arith.constant 0 : i32
    %c0_i32_0 = arith.constant 0 : i32
    %c0_i32_1 = arith.constant 0 : i32
    return %c0_i32, %c0_i32_0 : i32, i32
  }
  func.func @transform_2(%arg0: i32) -> (i32, i32) {
    %c0_i32 = arith.constant 0 : i32
    %c0_i32_0 = arith.constant 0 : i32
    %c0_i32_1 = arith.constant 0 : i32
    return %c0_i32, %c0_i32_0 : i32, i32
  }
  func.func @transform_3(%arg0: i32) -> (i32, i32) {
    %c0_i32 = arith.constant 0 : i32
    %c0_i32_0 = arith.constant 0 : i32
    return %arg0, %c0_i32 : i32, i32
  }
  func.func @transform_4(%arg0: i32) -> (i32, i32) {
    %c0_i32 = arith.constant 0 : i32
    %c0_i32_0 = arith.constant 0 : i32
    return %arg0, %c0_i32 : i32, i32
  }
}

module attributes {stable_mosaic.version = 11 : i64} {
  func.func @_fused_linear_kernel(%arg0: i32, %arg1: memref<2x128xf32, #tpu.memory_space<vmem>>, %arg2: memref<1x128xf32, #tpu.memory_space<vmem>>, %arg3: memref<1x128xf32, #tpu.memory_space<vmem>>, %arg4: memref<128x128xbf16, #tpu.memory_space<vmem>>, %arg5: memref<1x128xf32, #tpu.memory_space<vmem>>, %arg6: memref<2x128xf32, #tpu.memory_space<vmem>>) attributes {dimension_semantics = [#tpu.dimension_semantics<parallel>], iteration_bounds = array<i64: 1>, scalar_prefetch = 0 : i64, scratch_operands = 0 : i64, tpu.core_type = #tpu.core_type<tc>, window_params = [{transform_indices = @transform_0, window_bounds = array<i64: 2, 128>}, {pipeline_mode = #tpu.pipeline_mode<synchronous>, transform_indices = @transform_1, window_bounds = array<i64: 1, 128>}, {pipeline_mode = #tpu.pipeline_mode<synchronous>, transform_indices = @transform_2, window_bounds = array<i64: 1, 128>}, {pipeline_mode = #tpu.pipeline_mode<synchronous>, transform_indices = @transform_3, window_bounds = array<i64: 128, 128>}, {pipeline_mode = #tpu.pipeline_mode<synchronous>, transform_indices = @transform_4, window_bounds = array<i64: 1, 128>}, {transform_indices = @transform_5, window_bounds = array<i64: 2, 128>}]} {
    %c0 = arith.constant 0 : index
    %c0_0 = arith.constant 0 : index
    %0 = vector.load %arg1[%c0, %c0_0] : memref<2x128xf32, #tpu.memory_space<vmem>>, vector<2x128xf32>
    %cst = arith.constant dense<0.000000e+00> : vector<2xf32>
    %1 = vector.multi_reduction <add>, %0, %cst [1] : vector<2x128xf32> to vector<2xf32>
    %2 = vector.shape_cast %1 : vector<2xf32> to vector<2x1xf32>
    %cst_1 = arith.constant 1.280000e+02 : f32
    %3 = vector.broadcast %cst_1 : f32 to vector<2x1xf32>
    %4 = arith.divf %2, %3 : vector<2x1xf32>
    %5 = vector.broadcast %4 : vector<2x1xf32> to vector<2x128xf32>
    %6 = arith.subf %0, %5 : vector<2x128xf32>
    %7 = arith.mulf %6, %6 : vector<2x128xf32>
    %cst_2 = arith.constant dense<0.000000e+00> : vector<2xf32>
    %8 = vector.multi_reduction <add>, %7, %cst_2 [1] : vector<2x128xf32> to vector<2xf32>
    %9 = vector.shape_cast %8 : vector<2xf32> to vector<2x1xf32>
    %cst_3 = arith.constant 1.280000e+02 : f32
    %10 = vector.broadcast %cst_3 : f32 to vector<2x1xf32>
    %11 = arith.divf %9, %10 : vector<2x1xf32>
    %12 = vector.broadcast %4 : vector<2x1xf32> to vector<2x128xf32>
    %13 = arith.subf %0, %12 : vector<2x128xf32>
    %cst_4 = arith.constant 9.99999997E-7 : f32
    %14 = vector.broadcast %cst_4 : f32 to vector<2x1xf32>
    %15 = arith.addf %11, %14 : vector<2x1xf32>
    %16 = math.rsqrt %15 : vector<2x1xf32>
    %17 = vector.broadcast %16 : vector<2x1xf32> to vector<2x128xf32>
    %18 = arith.mulf %13, %17 : vector<2x128xf32>
    %c0_5 = arith.constant 0 : index
    %c0_6 = arith.constant 0 : index
    %19 = vector.load %arg2[%c0_5, %c0_6] : memref<1x128xf32, #tpu.memory_space<vmem>>, vector<1x128xf32>
    %20 = vector.broadcast %19 : vector<1x128xf32> to vector<2x128xf32>
    %21 = arith.mulf %18, %20 : vector<2x128xf32>
    %c0_7 = arith.constant 0 : index
    %c0_8 = arith.constant 0 : index
    %22 = vector.load %arg3[%c0_7, %c0_8] : memref<1x128xf32, #tpu.memory_space<vmem>>, vector<1x128xf32>
    %23 = vector.broadcast %22 : vector<1x128xf32> to vector<2x128xf32>
    %24 = arith.addf %21, %23 : vector<2x128xf32>
    %25 = arith.truncf %24 : vector<2x128xf32> to vector<2x128xbf16>
    %c0_9 = arith.constant 0 : index
    %c0_10 = arith.constant 0 : index
    %26 = vector.load %arg4[%c0_9, %c0_10] : memref<128x128xbf16, #tpu.memory_space<vmem>>, vector<128x128xbf16>
    %cst_11 = arith.constant dense<0.000000e+00> : vector<2x128xf32>
    %27 = tpu.matmul %25, %26, %cst_11 {dimension_numbers = #tpu.dot_dimension_numbers<[1], [0], [0], [1], [0, 0, 1, 1], [], []>} : vector<2x128xbf16>, vector<128x128xbf16>, vector<2x128xf32> -> vector<2x128xf32>
    %c0_12 = arith.constant 0 : index
    %c0_13 = arith.constant 0 : index
    %28 = vector.load %arg5[%c0_12, %c0_13] : memref<1x128xf32, #tpu.memory_space<vmem>>, vector<1x128xf32>
    %29 = vector.broadcast %28 : vector<1x128xf32> to vector<2x128xf32>
    %30 = arith.addf %27, %29 : vector<2x128xf32>
    %c0_14 = arith.constant 0 : index
    %c0_15 = arith.constant 0 : index
    %31 = vector.load %arg6[%c0_14, %c0_15] : memref<2x128xf32, #tpu.memory_space<vmem>>, vector<2x128xf32>
    tpu.vector_store %arg6[%c0_14, %c0_15], %30 {strides = array<i32>} : memref<2x128xf32, #tpu.memory_space<vmem>>, vector<2x128xf32>,
    return
  }
  func.func @transform_0(%arg0: i32) -> (i32, i32) {
    %c0_i32 = arith.constant 0 : i32
    %c0_i32_0 = arith.constant 0 : i32
    return %arg0, %c0_i32 : i32, i32
  }
  func.func @transform_1(%arg0: i32) -> (i32, i32) {
    %c0_i32 = arith.constant 0 : i32
    %c0_i32_0 = arith.constant 0 : i32
    %c0_i32_1 = arith.constant 0 : i32
    return %c0_i32, %c0_i32_0 : i32, i32
  }
  func.func @transform_2(%arg0: i32) -> (i32, i32) {
    %c0_i32 = arith.constant 0 : i32
    %c0_i32_0 = arith.constant 0 : i32
    %c0_i32_1 = arith.constant 0 : i32
    return %c0_i32, %c0_i32_0 : i32, i32
  }
  func.func @transform_3(%arg0: i32) -> (i32, i32) {
    %c0_i32 = arith.constant 0 : i32
    %c0_i32_0 = arith.constant 0 : i32
    %c0_i32_1 = arith.constant 0 : i32
    return %c0_i32, %c0_i32_0 : i32, i32
  }
  func.func @transform_4(%arg0: i32) -> (i32, i32) {
    %c0_i32 = arith.constant 0 : i32
    %c0_i32_0 = arith.constant 0 : i32
    %c0_i32_1 = arith.constant 0 : i32
    return %c0_i32, %c0_i32_0 : i32, i32
  }
  func.func @transform_5(%arg0: i32) -> (i32, i32) {
    %c0_i32 = arith.constant 0 : i32
    %c0_i32_0 = arith.constant 0 : i32
    return %arg0, %c0_i32 : i32, i32
  }
}

</mosaic_0001>

<bundles_post_ra>
// kernel: model_forward.13
= control target key start
LH: loop header
LB: loop body
LE: loop exit
PB: predicated region body
PF: predicated region fallthrough
CT: control target
= control target key end

     0   :  { %v430_v3 = vmov 0.0   ;;  %v431_v30 = vmov 0   ;;  %vm432_vm0 = vmmov 0   ;;  %v99_v53 = vlaneseq  ;;  %s587_s0 = inlined_call_operand.vmem [shape: f32[16,128], index: 0, kind: input, shape index: {}]   ;;  %s588_s3 = inlined_call_operand.vmem [shape: bf16[128,384], index: 3, kind: input, shape index: {}]   ;;  %s589_s1 = inlined_call_operand.vmem [shape: f32[1,128], index: 1, kind: input, shape index: {}]   ;;  %s590_s2 = inlined_call_operand.vmem [shape: f32[1,128], index: 2, kind: input, shape index: {}]   ;;  %s591_s4 = inlined_call_operand.vmem [shape: f32[1,384], index: 4, kind: input, shape index: {}]   ;;  %s592_s5 = inlined_call_operand.vmem [shape: f32[16,384], index: 5, kind: output, shape index: {}]  }
   0x1   :  { %v21_v0 = vld [vmem:[%s587_s0] sm:$0xff]  ;;  %v22_v1 = vld [vmem:[%s587_s0 + $0x8] sm:$0xff]  ;;  %371 = vmatprep.subr.bf16.mxu1 %v430_v3  ;;  %v404_v18 = vld [vmem:[%s588_s3 + $0x30] ss:$12 sps:$4 sm:$0xff]   ;;  %274 = vmatprep.mubr.bf16.mxu0 %v431_v30 }
   0x2   :  { %23 = vadd.xlane.f32.xlu0 %v21_v0  ;;  %v394_v2 = vld [vmem:[%s588_s3 + $0x4] ss:$12 sps:$4 sm:$0xff]   ;;  %v396_v4 = vld [vmem:[%s588_s3] ss:$12 sps:$4 sm:$0xff]   ;;  %v397_v5 = vld [vmem:[%s588_s3 + $0x8] ss:$12 sps:$4 sm:$0xff]   ;;  %387 = vmatprep.mubr.msk.bf16.mxu1 %vm432_vm0, %v430_v3 }
   0x3   :  { %242 = vmatprep.subr.bf16.mxu0 %v394_v2  ;;  %v398_v6 = vld [vmem:[%s588_s3 + $0x1c] ss:$12 sps:$4 sm:$0xff]   ;;  %372 = vmatpush3.bf16.msra.mxu1 %v397_v5  ;;  %v400_v15 = vld [vmem:[%s588_s3 + $0x18] ss:$12 sps:$4 sm:$0xff]   ;;  %v401_v16 = vld [vmem:[%s588_s3 + $0x20] ss:$12 sps:$4 sm:$0xff]  }
   0x4   :  { %243 = vmatpush1.bf16.msra.mxu0 %v396_v4  ;;  %373 = vmatprep.subr.bf16.mxu1 %v430_v3  ;;  %v402_v17 = vld [vmem:[%s588_s3 + $0x34] ss:$12 sps:$4 sm:$0xff]   ;;  %v405_v19 = vld [vmem:[%s588_s3 + $0x38] ss:$12 sps:$4 sm:$0xff]   ;;  %v409_v22 = vld [vmem:[%s588_s3 + $0x50] ss:$12 sps:$4 sm:$0xff]  }
   0x5   :  { %244 = vmatprep.subr.bf16.mxu0 %v398_v6  ;;  %v406_v20 = vld [vmem:[%s588_s3 + $0x4c] ss:$12 sps:$4 sm:$0xff]   ;;  %v408_v21 = vld [vmem:[%s588_s3 + $0x48] ss:$12 sps:$4 sm:$0xff]   ;;  %v410_v23 = vld [vmem:[%s588_s3 + $0x64] ss:$12 sps:$4 sm:$0xff]  }
   0x6   :  { %25 = vadd.xlane.f32.xlu0 %v22_v1  ;;  %v412_v24 = vld [vmem:[%s588_s3 + $0x60] ss:$12 sps:$4 sm:$0xff]   ;;  %v413_v25 = vld [vmem:[%s588_s3 + $0x68] ss:$12 sps:$4 sm:$0xff]   ;;  %v416_v27 = vld [vmem:[%s588_s3 + $0x78] ss:$12 sps:$4 sm:$0xff]  }
   0x7   :  { %374 = vmatpush3.bf16.msra.mxu1 %v401_v16  ;;  %v414_v26 = vld [vmem:[%s588_s3 + $0x7c] ss:$12 sps:$4 sm:$0xff]   ;;  %v417_v28 = vld [vmem:[%s588_s3 + $0x80] ss:$12 sps:$4 sm:$0xff]   ;;  %v421_v32 = vld [vmem:[%s588_s3 + $0x98] ss:$12 sps:$4 sm:$0xff]  }
   0x8   :  { %245 = vmatpush1.bf16.msra.mxu0 %v400_v15  ;;  %375 = vmatprep.subr.bf16.mxu1 %v430_v3  ;;  %v418_v29 = vld [vmem:[%s588_s3 + $0x94] ss:$12 sps:$4 sm:$0xff]   ;;  %v420_v31 = vld [vmem:[%s588_s3 + $0x90] ss:$12 sps:$4 sm:$0xff]   ;;  %v422_v33 = vld [vmem:[%s588_s3 + $0xac] ss:$12 sps:$4 sm:$0xff]  }
   0x9   :  { %246 = vmatprep.subr.bf16.mxu0 %v402_v17  ;;  %v424_v34 = vld [vmem:[%s588_s3 + $0xa8] ss:$12 sps:$4 sm:$0xff]   ;;  %v425_v35 = vld [vmem:[%s588_s3 + $0xb0] ss:$12 sps:$4 sm:$0xff]   ;;  %v336_v44 = vld [vmem:[%s589_s1] ss:$0 sm:$0xff] }
   0xa   :  { %v337_v48 = vld [vmem:[%s590_s2] ss:$0 sm:$0xff]  ;;  %v100_v54 = vshrl.u32 %v99_v53, 7 }
   0xb   :  { %376 = vmatpush3.bf16.msra.mxu1 %v405_v19  ;;  %v97_v57 = vld [vmem:[%s591_s4] sm:$0x7] }
   0xc   :  { %247 = vmatpush1.bf16.msra.mxu0 %v404_v18  ;;  %377 = vmatprep.subr.bf16.mxu1 %v430_v3  ;;  %v101_v55 = vsub.s32 0, %v100_v54  ;;  %v109_v56 = vsub.s32 2, %v100_v54  ;;  %v105_v58 = vsub.s32 1, %v100_v54 }
   0xd   :  { %248 = vmatprep.subr.bf16.mxu0 %v406_v20 }
   0xe   :  { %v102_v59 = vrot.slane %v97_v57, %v101_v55  ;;  %v110_v60 = vrot.slane %v97_v57, %v109_v56  ;;  %v106_v61 = vrot.slane %v97_v57, %v105_v58 }
   0xf   :  { %378 = vmatpush3.bf16.msra.mxu1 %v409_v22 }
  0x10   :  { %249 = vmatpush1.bf16.msra.mxu0 %v408_v21  ;;  %379 = vmatprep.subr.bf16.mxu1 %v430_v3 }
  0x11   :  { %250 = vmatprep.subr.bf16.mxu0 %v410_v23 }
  0x13   :  { %380 = vmatpush3.bf16.msra.mxu1 %v413_v25 }
  0x14   :  { %251 = vmatpush1.bf16.msra.mxu0 %v412_v24  ;;  %381 = vmatprep.subr.bf16.mxu1 %v430_v3 }
  0x15   :  { %252 = vmatprep.subr.bf16.mxu0 %v414_v26 }
  0x17   :  { %382 = vmatpush3.bf16.msra.mxu1 %v417_v28 }
  0x18   :  { %253 = vmatpush1.bf16.msra.mxu0 %v416_v27  ;;  %383 = vmatprep.subr.bf16.mxu1 %v430_v3 }
  0x19   :  { %254 = vmatprep.subr.bf16.mxu0 %v418_v29 }
  0x1b   :  { %384 = vmatpush3.bf16.msra.mxu1 %v421_v32 }
  0x1c   :  { %255 = vmatpush1.bf16.msra.mxu0 %v420_v31  ;;  %385 = vmatprep.subr.bf16.mxu1 %v430_v3 }
  0x1d   :  { %256 = vmatprep.subr.bf16.mxu0 %v422_v33 }
  0x1f   :  { %386 = vmatpush3.bf16.msra.mxu1 %v425_v35 }
  0x20   :  { %257 = vmatpush1.bf16.msra.mxu0 %v424_v34 }
  0x8f   :  { %v24_v7 = vpop.xlane.xlu0 %23 }
  0x90   :  { %v28_v8 = vmul.f32 0.0078125, %v24_v7 }
  0x92   :  { %v483_v9 = vsub.f32 %v21_v0, %v28_v8 }
  0x93   :  { %v26_v10 = vpop.xlane.xlu0 %25 }
  0x94   :  { %v29_v11 = vmul.f32 0.0078125, %v26_v10  ;;  %v32_v12 = vmul.f32 %v483_v9, %v483_v9 }
  0x96   :  { %v487_v13 = vsub.f32 %v22_v1, %v29_v11  ;;  %34 = vadd.xlane.f32.xlu1 %v32_v12 }
  0x98   :  { %v33_v14 = vmul.f32 %v487_v13, %v487_v13 }
  0x9a   :  { %36 = vadd.xlane.f32.xlu1 %v33_v14 }
 0x123   :  { %v35_v36 = vpop.xlane.xlu1 %34 }
 0x124   :  { %v38_v37 = vmul.f32 0.0078125, %v35_v36 }
 0x126   :  { %v40_v38 = vadd.f32 1e-06, %v38_v37 }
 0x127   :  { %v37_v39 = vpop.xlane.xlu1 %36 }
 0x128   :  { %426 = vrsqrt.f32 %v40_v38  ;;  %v39_v40 = vmul.f32 0.0078125, %v37_v39 }
 0x12a   :  { %v41_v41 = vadd.f32 1e-06, %v39_v40 }
 0x12c   :  { %428 = vrsqrt.f32 %v41_v41 }
 0x132   :  { %v427_v42 = vpop.eup %426 }
 0x133   :  { %v44_v43 = vmul.f32 %v427_v42, %v483_v9 }
 0x135   :  { %v53_v47 = vmul.f32 %v336_v44, %v44_v43 }
 0x136   :  { %v429_v45 = vpop.eup %428 }
 0x137   :  { %v45_v46 = vmul.f32 %v429_v45, %v487_v13  ;;  %v62_v50 = vadd.f32 %v337_v48, %v53_v47 }
 0x139   :  { %v54_v49 = vmul.f32 %v336_v44, %v45_v46 }
 0x13b   :  { %v63_v51 = vadd.f32 %v337_v48, %v54_v49 }
 0x13d   :  { %v64_v52 = vpack.c.bf16 %v63_v51, %v62_v50 }
 0x13f   :  { %275 = vmatmul.mubr.bf16.vlgmr.msra.gmra.mrb[0].mxu0 %v64_v52  ;;  %388 = vmatmul.mubr.bf16.vlgmr.msra.gmra.mrb[0].mxu1 %v64_v52 }
 0x212   :  { %v276_v62 = vpop.f32.mrb[0].mxu0  ;;  %v319_v63 = vpop.f32.mrb[0].mxu1 }
 0x213   :  { %v277_v0 = vadd.f32 %v276_v62, %v102_v59  ;;  %v320_v1 = vadd.f32 %v319_v63, %v110_v60  ;;  %v278_v2 = vpop.f32.mrb[1].mxu0  ;;  %v389_v3 = vpop.f32.mrb[1].mxu1 }
 0x214   :  { %v279_v4 = vadd.f32 %v278_v2, %v106_v61  ;;  %v280_v5 = vpop.f32.mrb[2].mxu0  ;;  %v322_v6 = vpop.f32.mrb[2].mxu1 }
 0x215   :  { %326 = vst [vmem:[%s592_s5] sm:$0xff] %v277_v0  ;;  %328 = vst [vmem:[%s592_s5 + $0x10] sm:$0xff] %v320_v1  ;;  %v281_v7 = vadd.f32 %v280_v5, %v102_v59  ;;  %v323_v8 = vadd.f32 %v322_v6, %v110_v60  ;;  %v282_v9 = vpop.f32.mrb[3].mxu0  ;;  %v390_v10 = vpop.f32.mrb[3].mxu1 }
 0x216   :  { %327 = vst [vmem:[%s592_s5 + $0x8] sm:$0xff] %v279_v4  ;;  %v283_v11 = vadd.f32 %v282_v9, %v106_v61 }
 0x217   :  { %329 = vst [vmem:[%s592_s5 + $0x18] sm:$0xff] %v281_v7  ;;  %331 = vst [vmem:[%s592_s5 + $0x28] sm:$0xff] %v323_v8 }
 0x218   :  { %330 = vst [vmem:[%s592_s5 + $0x20] sm:$0xff] %v283_v11 }

// kernel: model_forward.15
= control target key start
LH: loop header
LB: loop body
LE: loop exit
PB: predicated region body
PF: predicated region fallthrough
CT: control target
= control target key end

     0   :  { %v191_v0 = vmov 0.0   ;;  %vm192_vm0 = vmmov 0   ;;  %s263_s1 = inlined_call_operand.vmem [shape: bf16[128,128], index: 1, kind: input, shape index: {}]   ;;  %s264_s0 = inlined_call_operand.vmem [shape: f32[16,128], index: 0, kind: input, shape index: {}]   ;;  %s265_s2 = inlined_call_operand.vmem [shape: f32[1,128], index: 2, kind: input, shape index: {}]   ;;  %s266_s3 = inlined_call_operand.vmem [shape: f32[16,128], index: 3, kind: input, shape index: {}]   ;;  %s267_s4 = inlined_call_operand.vmem [shape: f32[16,128], index: 4, kind: output, shape index: {}]  }
   0x1   :  { %161 = vmatprep.subr.bf16.mxu0 %v191_v0  ;;  %v183_v1 = vld [vmem:[%s263_s1] sm:$0xff]   ;;  %177 = vmatprep.mubr.msk.bf16.mxu0 %vm192_vm0, %v191_v0  ;;  %v184_v2 = vld [vmem:[%s263_s1 + $0x8] sm:$0xff]   ;;  %v185_v3 = vld [vmem:[%s263_s1 + $0x10] sm:$0xff]  }
   0x2   :  { %162 = vmatpush3.bf16.msra.mxu0 %v183_v1  ;;  %v186_v4 = vld [vmem:[%s263_s1 + $0x18] sm:$0xff]   ;;  %v187_v5 = vld [vmem:[%s263_s1 + $0x20] sm:$0xff]   ;;  %v188_v6 = vld [vmem:[%s263_s1 + $0x28] sm:$0xff]  }
   0x3   :  { %163 = vmatprep.subr.bf16.mxu0 %v191_v0  ;;  %v189_v7 = vld [vmem:[%s263_s1 + $0x30] sm:$0xff]   ;;  %v190_v8 = vld [vmem:[%s263_s1 + $0x38] sm:$0xff]   ;;  %v18_v9 = vld [vmem:[%s264_s0] sm:$0xff] }
   0x4   :  { %v19_v10 = vld [vmem:[%s264_s0 + $0x8] sm:$0xff]  ;;  %v143_v12 = vld [vmem:[%s265_s2] ss:$0 sm:$0xff] }
   0x5   :  { %v20_v11 = vpack.c.bf16 %v19_v10, %v18_v9  ;;  %v133_v14 = vld [vmem:[%s266_s3] sm:$0xff]  ;;  %v134_v18 = vld [vmem:[%s266_s3 + $0x8] sm:$0xff] }
   0x6   :  { %164 = vmatpush3.bf16.msra.mxu0 %v184_v2 }
   0x7   :  { %165 = vmatprep.subr.bf16.mxu0 %v191_v0 }
   0xa   :  { %166 = vmatpush3.bf16.msra.mxu0 %v185_v3 }
   0xb   :  { %167 = vmatprep.subr.bf16.mxu0 %v191_v0 }
   0xe   :  { %168 = vmatpush3.bf16.msra.mxu0 %v186_v4 }
   0xf   :  { %169 = vmatprep.subr.bf16.mxu0 %v191_v0 }
  0x12   :  { %170 = vmatpush3.bf16.msra.mxu0 %v187_v5 }
  0x13   :  { %171 = vmatprep.subr.bf16.mxu0 %v191_v0 }
  0x16   :  { %172 = vmatpush3.bf16.msra.mxu0 %v188_v6 }
  0x17   :  { %173 = vmatprep.subr.bf16.mxu0 %v191_v0 }
  0x1a   :  { %174 = vmatpush3.bf16.msra.mxu0 %v189_v7 }
  0x1b   :  { %175 = vmatprep.subr.bf16.mxu0 %v191_v0 }
  0x1e   :  { %176 = vmatpush3.bf16.msra.mxu0 %v190_v8 }
  0x21   :  { %178 = vmatmul.mubr.bf16.vlgmr.msra.gmra.mrb[0].mxu0 %v20_v11 }
  0xf4   :  { %v126_v13 = vpop.f32.mrb[0].mxu0 }
  0xf5   :  { %v127_v15 = vadd.f32 %v143_v12, %v126_v13  ;;  %v179_v16 = vpop.f32.mrb[1].mxu0 }
  0xf6   :  { %v129_v17 = vpop.f32.mrb[2].mxu0 }
  0xf7   :  { %v135_v19 = vadd.f32 %v133_v14, %v127_v15  ;;  %v130_v20 = vadd.f32 %v143_v12, %v129_v17  ;;  %v180_v21 = vpop.f32.mrb[3].mxu0 }
  0xf9   :  { %137 = vst [vmem:[%s267_s4] sm:$0xff] %v135_v19  ;;  %v136_v22 = vadd.f32 %v134_v18, %v130_v20 }
  0xfb   :  { %138 = vst [vmem:[%s267_s4 + $0x8] sm:$0xff] %v136_v22 }

// kernel: model_forward.14
= control target key start
LH: loop header
LB: loop body
LE: loop exit
PB: predicated region body
PF: predicated region fallthrough
CT: control target
= control target key end

     0   :  { %s780_s6 = smov 0   ;;  %s887_s0 = inlined_call_operand.vmem [shape: f32[2,8,384], index: 0, kind: input, shape index: {}]   ;;  %s888_s1 = inlined_call_operand.vmem [shape: f32[2,8,128], index: 1, kind: output, shape index: {}]  }
   0x1 LB: > { %s646_s7 = sadd.s32 4294967295, %s763_s6   ;;  %p650_p0 = scmp.ge.s32.totalorder %s763_s6, 1  ;;  %s763_s6 = sphi %s780_s6, %s11_s6  }
   0x2   : > { %p87_p1 = scmp.lt.s32.totalorder %s763_s6, 3 }
   0x4   : > { %p88_p2 = pnand %p650_p0, %p87_p1 }
   0x5   : > { %p106_p3 = scmp.lt.s32.totalorder (!%p88_p2), %s646_s7, 1  ;;  %v765_v0 = vmov (!%p88_p2), 0.0   ;;  %vm766_vm0 = vmmov (!%p88_p2), 0   ;;  %vm124_vm1 = vcmask (!%p88_p2), 261120   ;;  %v119_v6 = vlaneseq (!%p88_p2)  ;;  %s767_s12 = smov (!%p88_p2), 96  }
   0x6   : > { %91 = sbr.rel (%p88_p2) target bundleno = 1480 (0x5c8), region = 24  ;;  %679 = vmatprep.subr.bf16.mxu0 (!%p88_p2), %v765_v0  ;;  %681 = vmatprep.mubr.msk.bf16.mxu0 (!%p88_p2), %vm766_vm0, %v765_v0  ;;  %vm175_vm3 = vcmask (!%p88_p2), 64512   ;;  %s768_s13 = smov (!%p88_p2), 64   ;;  %vm192_vm4 = vcmask (!%p88_p2), 1043456   ;;  %vm588_vm5 = vcmask (!%p88_p2), 523264   ;;  %vm590_vm6 = vcmask (!%p88_p2), 785408  }
   0x7   : > { %685 = vmatprep.subr.bf16.mxu1 (!%p88_p2), %v765_v0  ;;  %687 = vmatprep.mubr.msk.bf16.mxu1 (!%p88_p2), %vm766_vm0, %v765_v0  ;;  %v809_v7 = vand.u32 (!%p88_p2), 127, %v119_v6  ;;  %s769_s14 = smov (!%p88_p2), 32  }
   0x9   : > { %vm121_vm2 = vcmp.lt.s32.totalorder (!%p88_p2), %v809_v7, 5 }
   0xd   : > { %s890_s7 = smov (!%p106_p3, %s646_s7), 1 }
   0xe   : > { %s727_s8 = smul.u32 24, %s890_s7  ;;  %s652_s15 = sshll.u32 %s890_s7, 3 }
   0xf   : > { %s114_s18 = scalar_lea.vmem %s888_s1, %s652_s15 }
  0x10   : > { %s800_s11 = scalar_lea.vmem %s887_s0, %s727_s8 }
  0x11   : > { %v117_v1 = vld [vmem:[%s800_s11 + $0x8] sm:$0xff]  ;;  %v116_v4 = vld [vmem:[%s800_s11] sm:$0xff]  ;;  %v118_v20 = vld [vmem:[%s800_s11 + $0x10] sm:$0xff] }
  0x12   : > { %v123_v2 = vpack.c.bf16 %v117_v1, %v117_v1  ;;  %v122_v5 = vpack.c.bf16 %v116_v4, %v116_v4  ;;  %v822_v21 = vpack.c.bf16 %v118_v20, %v118_v20 }
  0x14   : > { %v129_v3 = vsel %vm124_vm1, %v123_v2, 0  ;;  %240 = vrot.lane.b32.xlu1 %v123_v2, %s767_s12  ;;  %v194_v22 = vsel %vm192_vm4, %v822_v21, 0 }
  0x15   : > { %680 = vmatpush3.bf16.xpose.msra.mxu0 %v129_v3  ;;  %686 = vmatpush3.bf16.msra.mxu1 %v194_v22 }
  0x16   : > { %697 = vmatprep.subr.bf16.mxu0 %v765_v0  ;;  %691 = vmatprep.subr.bf16.mxu1 %v765_v0 }
  0x18   : > { %237 = vrot.lane.b32.xlu1 %v122_v5, %s767_s12 }
  0x1c   : > { %682 = vmatmul.mubr.msk.bf16.vlgmr.msra.gmra.mrb[0].mxu0 %vm124_vm1, %v122_v5  ;;  %351 = vrot.lane.b32.xlu1 %v122_v5, %s768_s13 }
  0x1d   : > { %699 = vmatprep.mubr.msk.bf16.mxu0 %vm766_vm0, %v765_v0 }
  0x20   : > { %465 = vrot.lane.b32.xlu1 %v123_v2, %s769_s14 }
  0x24   : > { %463 = vrot.lane.b32.xlu1 %v122_v5, %s769_s14 }
  0x86   : > { %v241_v25 = vpop.permute.xlu1 %240 }
  0x87   : > { %v246_v27 = vsel %vm124_vm1, %v241_v25, 0 }
  0x8a   : > { %v238_v29 = vpop.permute.xlu1 %237 }
  0x8e   : > { %v352_v31 = vpop.permute.xlu1 %351 }
  0x92   : > { %v466_v33 = vpop.permute.xlu1 %465 }
  0x93   : > { %v471_v34 = vsel %vm124_vm1, %v466_v33, 0 }
  0x96   : > { %v464_v35 = vpop.permute.xlu1 %463 }
  0xef   : > { %v165_v8 = vpop.f32.mrb[0].mxu0 }
  0xf0   : > { %v171_v9 = vmul.f32 0.17677669, %v165_v8  ;;  %v683_v10 = vpop.f32.mrb[1].mxu0 }
  0xf1   : > { %v168_v11 = vpop.f32.mrb[2].mxu0 }
  0xf2   : > { %v684_v12 = vpop.f32.mrb[3].mxu0  ;;  %v174_v13 = vsel %vm121_vm2, %v171_v9, -1e+30 }
  0xf3   : > { %v176_v14 = vsel %vm175_vm3, %v174_v13, -inf }
  0xf4   : > { %177 = vmax.xlane.f32.xlu0 %v176_v14 }
 0x181   : > { %v178_v15 = vpop.xlane.xlu0 %177 }
 0x182   : > { %v179_v16 = vsub.f32 %v174_v13, %v178_v15 }
 0x184   : > { %v180_v17 = vmul.f32 1.442695, %v179_v16 }
 0x186   : > { %741 = vpow2.f32 %v180_v17 }
 0x190   : > { %v742_v18 = vpop.eup %741 }
 0x191   : > { %v182_v19 = vsel %vm175_vm3, %v742_v18, 0.0 }
 0x192   : > { %183 = vadd.xlane.f32.xlu0 %v182_v19 }
 0x1a8   : > { %353 = vrot.lane.b32.xlu0 %v123_v2, %s768_s13 }
 0x21f   : > { %v184_v23 = vpop.xlane.xlu0 %183 }
 0x220   : > { %743 = vrcp.f32 %v184_v23 }
 0x223   : > { %v354_v30 = vpop.permute.xlu0 %353 }
 0x224   : > { %v359_v32 = vsel %vm124_vm1, %v354_v30, 0 }
 0x22a   : > { %v744_v24 = vpop.eup %743 }
 0x22b   : > { %v186_v26 = vmul.f32 %v744_v24, %v742_v18 }
 0x22d   : > { %v187_v28 = vpack.c.bf16 %v186_v26, %v186_v26 }
 0x22f   : > { %688 = vmatmul.mubr.msk.bf16.vlgmr.msra.gmra.mrb[0].mxu1 %vm175_vm3, %v187_v28 }
 0x230   : > { %692 = vmatpush3.bf16.xpose.msra.mxu1 %v246_v27  ;;  %693 = vmatprep.mubr.msk.bf16.mxu1 %vm766_vm0, %v765_v0 }
 0x231   : > { %703 = vmatprep.subr.bf16.mxu1 %v765_v0 }
 0x237   : > { %694 = vmatmul.mubr.msk.bf16.vlgmr.msra.gmra.mrb[4].mxu1 %vm124_vm1, %v238_v29 }
 0x238   : > { %704 = vmatpush3.bf16.xpose.msra.mxu1 %v359_v32  ;;  %705 = vmatprep.mubr.msk.bf16.mxu1 %vm766_vm0, %v765_v0 }
 0x239   : > { %715 = vmatprep.subr.bf16.mxu1 %v765_v0 }
 0x23f   : > { %706 = vmatmul.mubr.msk.bf16.vlgmr.msra.gmra.mrb[8].mxu1 %vm124_vm1, %v352_v31 }
 0x240   : > { %716 = vmatpush3.bf16.xpose.msra.mxu1 %v471_v34  ;;  %717 = vmatprep.mubr.msk.bf16.mxu1 %vm766_vm0, %v765_v0 }
 0x247   : > { %718 = vmatmul.mubr.msk.bf16.vlgmr.msra.gmra.mrb[12].mxu1 %vm124_vm1, %v464_v35 }
 0x302   : > { %v843_v36 = vpop.f32.mrb[0].mxu1 }
 0x303   : > { %v689_v37 = vpop.f32.mrb[1].mxu1 }
 0x304   : > { %v233_v38 = vpop.f32.mrb[2].mxu1 }
 0x305   : > { %v690_v39 = vpop.f32.mrb[3].mxu1 }
 0x30a   : > { %v282_v40 = vpop.f32.mrb[4].mxu1 }
 0x30b   : > { %v288_v41 = vmul.f32 0.17677669, %v282_v40  ;;  %v695_v42 = vpop.f32.mrb[5].mxu1 }
 0x30c   : > { %v285_v43 = vpop.f32.mrb[6].mxu1 }
 0x30d   : > { %v696_v44 = vpop.f32.mrb[7].mxu1  ;;  %v289_v45 = vsel %vm121_vm2, %v288_v41, -1e+30 }
 0x30e   : > { %v290_v46 = vsel %vm175_vm3, %v289_v45, -inf }
 0x30f   : > { %291 = vmax.xlane.f32.xlu1 %v290_v46 }
 0x312   : > { %v395_v47 = vpop.f32.mrb[8].mxu1 }
 0x313   : > { %v401_v48 = vmul.f32 0.17677669, %v395_v47  ;;  %v707_v49 = vpop.f32.mrb[9].mxu1 }
 0x314   : > { %v398_v50 = vpop.f32.mrb[10].mxu1 }
 0x315   : > { %v402_v51 = vsel %vm121_vm2, %v401_v48, -1e+30  ;;  %v708_v52 = vpop.f32.mrb[11].mxu1 }
 0x316   : > { %v403_v53 = vsel %vm175_vm3, %v402_v51, -inf }
 0x317   : > { %404 = vmax.xlane.f32.xlu0 %v403_v53 }
 0x31a   : > { %v507_v54 = vpop.f32.mrb[12].mxu1 }
 0x31b   : > { %v513_v55 = vmul.f32 0.17677669, %v507_v54  ;;  %v719_v56 = vpop.f32.mrb[13].mxu1 }
 0x31c   : > { %v510_v57 = vpop.f32.mrb[14].mxu1 }
 0x31d   : > { %v514_v58 = vsel %vm121_vm2, %v513_v55, -1e+30  ;;  %v720_v59 = vpop.f32.mrb[15].mxu1 }
 0x31e   : > { %v515_v60 = vsel %vm175_vm3, %v514_v58, -inf }
 0x31f   : > { %516 = vmax.xlane.f32.xlu1 %v515_v60 }
 0x39c   : > { %v292_v61 = vpop.xlane.xlu1 %291 }
 0x39d   : > { %v293_v62 = vsub.f32 %v289_v45, %v292_v61 }
 0x39f   : > { %v294_v63 = vmul.f32 1.442695, %v293_v62 }
 0x3a1   : > { %745 = vpow2.f32 %v294_v63 }
 0x3a4   : > { %v405_v1 = vpop.xlane.xlu0 %404 }
 0x3a5   : > { %v406_v2 = vsub.f32 %v402_v51, %v405_v1 }
 0x3a7   : > { %v407_v3 = vmul.f32 1.442695, %v406_v2 }
 0x3a9   : > { %747 = vpow2.f32 %v407_v3 }
 0x3ab   : > { %v746_v4 = vpop.eup %745 }
 0x3ac   : > { %v296_v5 = vsel %vm175_vm3, %v746_v4, 0.0  ;;  %v517_v8 = vpop.xlane.xlu1 %516 }
 0x3ad   : > { %297 = vadd.xlane.f32.xlu1 %v296_v5  ;;  %v518_v9 = vsub.f32 %v514_v58, %v517_v8 }
 0x3af   : > { %v519_v10 = vmul.f32 1.442695, %v518_v9 }
 0x3b1   : > { %749 = vpow2.f32 %v519_v10 }
 0x3b3   : > { %v748_v6 = vpop.eup %747 }
 0x3b4   : > { %v409_v7 = vsel %vm175_vm3, %v748_v6, 0.0 }
 0x3b5   : > { %410 = vadd.xlane.f32.xlu0 %v409_v7 }
 0x3bb   : > { %v750_v11 = vpop.eup %749 }
 0x3bc   : > { %v521_v12 = vsel %vm175_vm3, %v750_v11, 0.0 }
 0x3be   : > { %415 = vrot.lane.b32.xlu1 %v822_v21, %s768_s13 }
 0x3cb   : > { %303 = vrot.lane.b32.xlu0 %v822_v21, %s767_s12 }
 0x3e2   : > { %522 = vadd.xlane.f32.xlu1 %v521_v12 }
 0x3f3   : > { %527 = vrot.lane.b32.xlu1 %v822_v21, %s769_s14 }
 0x43a   : > { %v298_v13 = vpop.xlane.xlu1 %297 }
 0x43b   : > { %751 = vrcp.f32 %v298_v13 }
 0x43e   : > { %v416_v19 = vpop.permute.xlu1 %415 }
 0x43f   : > { %v421_v22 = vsel %vm192_vm4, %v416_v19, 0 }
 0x442   : > { %v411_v14 = vpop.xlane.xlu0 %410 }
 0x443   : > { %753 = vrcp.f32 %v411_v14 }
 0x445   : > { %v752_v15 = vpop.eup %751 }
 0x446   : > { %v300_v16 = vmul.f32 %v752_v15, %v746_v4  ;;  %v304_v17 = vpop.permute.xlu0 %303 }
 0x447   : > { %v309_v18 = vsel %vm192_vm4, %v304_v17, 0 }
 0x448   : > { %698 = vmatpush3.bf16.msra.mxu0 %v309_v18  ;;  %v301_v20 = vpack.c.bf16 %v300_v16, %v300_v16 }
 0x449   : > { %709 = vmatprep.subr.bf16.mxu0 %v765_v0 }
 0x44b   : > { %700 = vmatmul.mubr.msk.bf16.vlgmr.msra.gmra.mrb[4].mxu0 %vm175_vm3, %v301_v20 }
 0x44c   : > { %710 = vmatpush3.bf16.msra.mxu0 %v421_v22  ;;  %711 = vmatprep.mubr.msk.bf16.mxu0 %vm766_vm0, %v765_v0 }
 0x44d   : > { %v754_v21 = vpop.eup %753  ;;  %721 = vmatprep.subr.bf16.mxu0 %v765_v0 }
 0x44e   : > { %v413_v23 = vmul.f32 %v754_v21, %v748_v6 }
 0x450   : > { %v414_v24 = vpack.c.bf16 %v413_v23, %v413_v23 }
 0x453   : > { %712 = vmatmul.mubr.msk.bf16.vlgmr.msra.gmra.mrb[8].mxu0 %vm175_vm3, %v414_v24 }
 0x454   : > { %723 = vmatprep.mubr.msk.bf16.mxu0 %vm766_vm0, %v765_v0 }
 0x46f   : > { %v523_v25 = vpop.xlane.xlu1 %522 }
 0x470   : > { %755 = vrcp.f32 %v523_v25 }
 0x473   : > { %v528_v26 = vpop.permute.xlu1 %527 }
 0x474   : > { %v533_v27 = vsel %vm192_vm4, %v528_v26, 0 }
 0x475   : > { %722 = vmatpush3.bf16.msra.mxu0 %v533_v27 }
 0x47a   : > { %v756_v28 = vpop.eup %755 }
 0x47b   : > { %v525_v29 = vmul.f32 %v756_v28, %v750_v11 }
 0x47d   : > { %v526_v30 = vpack.c.bf16 %v525_v29, %v525_v29 }
 0x47f   : > { %724 = vmatmul.mubr.msk.bf16.vlgmr.msra.gmra.mrb[12].mxu0 %vm175_vm3, %v526_v30 }
 0x51e   : > { %v345_v31 = vpop.f32.mrb[4].mxu0 }
 0x51f   : > { %576 = vrot.lane.b32.xlu0 %v345_v31, %s769_s14  ;;  %v701_v32 = vpop.f32.mrb[5].mxu0 }
 0x520   : > { %v348_v33 = vpop.f32.mrb[6].mxu0 }
 0x521   : > { %v702_v34 = vpop.f32.mrb[7].mxu0 }
 0x526   : > { %v457_v35 = vpop.f32.mrb[8].mxu0 }
 0x527   : > { %580 = vrot.lane.b32.xlu1 %v457_v35, %s768_s13  ;;  %v713_v0 = vpop.f32.mrb[9].mxu0 }
 0x528   : > { %v460_v37 = vpop.f32.mrb[10].mxu0 }
 0x529   : > { %v714_v38 = vpop.f32.mrb[11].mxu0 }
 0x552   : > { %v569_v39 = vpop.f32.mrb[12].mxu0 }
 0x553   : > { %584 = vrot.lane.b32.xlu0 %v569_v39, %s767_s12  ;;  %v725_v40 = vpop.f32.mrb[13].mxu0 }
 0x554   : > { %v572_v41 = vpop.f32.mrb[14].mxu0 }
 0x555   : > { %v726_v42 = vpop.f32.mrb[15].mxu0 }
 0x591   : > { %v577_v43 = vpop.permute.xlu0 %576 }
 0x592   : > { %v587_v45 = vsel %vm124_vm1, %v843_v36, %v577_v43 }
 0x599   : > { %v581_v44 = vpop.permute.xlu1 %580 }
 0x59a   : > { %v589_v46 = vsel %vm588_vm5, %v587_v45, %v581_v44 }
 0x5c5   : > { %v585_v47 = vpop.permute.xlu0 %584 }
 0x5c6   : > { %v591_v48 = vsel %vm590_vm6, %v589_v46, %v585_v47 }
 0x5c7   : > { %592 = vst [vmem:[%s114_s18] sm:$0xff] %v591_v48 }
 0x5c8 PF: > { %s11_s6 = sadd.s32 1, %s763_s6  }
 0x5c9   : > { %p8_p4 = scmp.ge.s32.totalorder %s11_s6, 4  }
 0x5cb   :  { %10 = sbr.rel (!%p8_p4) target bundleno = 1 (0x1), region = 54 }

// kernel: model_forward.12
= control target key start
LH: loop header
LB: loop body
LE: loop exit
PB: predicated region body
PF: predicated region fallthrough
CT: control target
= control target key end

     0   :  { %s1454_s1 = inlined_call_operand.vmem [shape: bf16[1280,128], index: 1, kind: input, shape index: {}]   ;;  %s1455_s0 = inlined_call_operand.vmem [shape: f32[8,1280], index: 0, kind: input, shape index: {}]   ;;  %s1456_s2 = inlined_call_operand.vmem [shape: f32[1,128], index: 2, kind: input, shape index: {}]   ;;  %s1457_s3 = inlined_call_operand.vmem [shape: f32[8,128], index: 3, kind: output, shape index: {}]  }
   0x1   :  { %v1078_v0 = vld [vmem:[%s1454_s1 + $0x40] sm:$0xff]   ;;  %v1082_v4 = vld [vmem:[%s1454_s1 + $0x48] sm:$0xff]   ;;  %v1086_v8 = vld [vmem:[%s1454_s1 + $0x50] sm:$0xff]  }
   0x2   :  { %v1079_v1 = vld [vmem:[%s1454_s1] sm:$0xff]   ;;  %968 = vmatprep.subr.bf16.mxu0 %v1078_v0  ;;  %v1083_v5 = vld [vmem:[%s1454_s1 + $0x8] sm:$0xff]   ;;  %v1087_v9 = vld [vmem:[%s1454_s1 + $0x10] sm:$0xff]  }
   0x3   :  { %v1080_v2 = vld [vmem:[%s1454_s1 + $0xc0] sm:$0xff]   ;;  %969 = vmatpush3.bf16.msra.mxu0 %v1079_v1  ;;  %v1084_v6 = vld [vmem:[%s1454_s1 + $0xc8] sm:$0xff]   ;;  %v1088_v10 = vld [vmem:[%s1454_s1 + $0xd0] sm:$0xff]  }
   0x4   :  { %v1081_v3 = vld [vmem:[%s1454_s1 + $0x80] sm:$0xff]   ;;  %990 = vmatprep.subr.bf16.mxu1 %v1080_v2  ;;  %970 = vmatprep.subr.bf16.mxu0 %v1082_v4  ;;  %v1085_v7 = vld [vmem:[%s1454_s1 + $0x88] sm:$0xff]   ;;  %v1089_v11 = vld [vmem:[%s1454_s1 + $0x90] sm:$0xff]  }
   0x5   :  { %991 = vmatpush3.bf16.msra.mxu1 %v1081_v3  ;;  %v1090_v12 = vld [vmem:[%s1454_s1 + $0x58] sm:$0xff]   ;;  %v1094_v16 = vld [vmem:[%s1454_s1 + $0x60] sm:$0xff]   ;;  %v1098_v20 = vld [vmem:[%s1454_s1 + $0x68] sm:$0xff]  }
   0x6   :  { %992 = vmatprep.subr.bf16.mxu1 %v1084_v6  ;;  %v1091_v13 = vld [vmem:[%s1454_s1 + $0x18] sm:$0xff]   ;;  %v1095_v17 = vld [vmem:[%s1454_s1 + $0x20] sm:$0xff]   ;;  %v1099_v21 = vld [vmem:[%s1454_s1 + $0x28] sm:$0xff]  }
   0x7   :  { %971 = vmatpush3.bf16.msra.mxu0 %v1083_v5  ;;  %v1092_v14 = vld [vmem:[%s1454_s1 + $0xd8] sm:$0xff]   ;;  %v1096_v18 = vld [vmem:[%s1454_s1 + $0xe0] sm:$0xff]   ;;  %v1100_v22 = vld [vmem:[%s1454_s1 + $0xe8] sm:$0xff]  }
   0x8   :  { %972 = vmatprep.subr.bf16.mxu0 %v1086_v8  ;;  %v1093_v15 = vld [vmem:[%s1454_s1 + $0x98] sm:$0xff]   ;;  %v1097_v19 = vld [vmem:[%s1454_s1 + $0xa0] sm:$0xff]   ;;  %v1101_v23 = vld [vmem:[%s1454_s1 + $0xa8] sm:$0xff]  }
   0x9   :  { %993 = vmatpush3.bf16.msra.mxu1 %v1085_v7  ;;  %v1102_v24 = vld [vmem:[%s1454_s1 + $0x70] sm:$0xff]   ;;  %v1106_v28 = vld [vmem:[%s1454_s1 + $0x78] sm:$0xff]   ;;  %v16_v31 = vld [vmem:[%s1455_s0 + $0x8] sm:$0xff] }
   0xa   :  { %994 = vmatprep.subr.bf16.mxu1 %v1088_v10  ;;  %v1103_v25 = vld [vmem:[%s1454_s1 + $0x30] sm:$0xff]   ;;  %v1107_v29 = vld [vmem:[%s1454_s1 + $0x38] sm:$0xff]   ;;  %v26_v32 = vpack.c.bf16 %v16_v31, %v16_v31  ;;  %v15_v34 = vld [vmem:[%s1455_s0] sm:$0xff] }
   0xb   :  { %973 = vmatpush3.bf16.msra.mxu0 %v1087_v9  ;;  %v1104_v26 = vld [vmem:[%s1454_s1 + $0xf0] sm:$0xff]   ;;  %v1108_v30 = vld [vmem:[%s1454_s1 + $0xf8] sm:$0xff]   ;;  %v25_v35 = vpack.c.bf16 %v15_v34, %v15_v34  ;;  %v1110_v36 = vld [vmem:[%s1454_s1 + $0x140] sm:$0xff]  }
   0xc   :  { %974 = vmatprep.subr.bf16.mxu0 %v1090_v12  ;;  %v1105_v27 = vld [vmem:[%s1454_s1 + $0xb0] sm:$0xff]   ;;  %v1109_v33 = vld [vmem:[%s1454_s1 + $0xb8] sm:$0xff]   ;;  %714 = vmatprep.mubr.bf16.mxu0 %v26_v32  ;;  %v1111_v39 = vld [vmem:[%s1454_s1 + $0x100] sm:$0xff]  }
   0xd   :  { %995 = vmatpush3.bf16.msra.mxu1 %v1089_v11  ;;  %v18_v37 = vld [vmem:[%s1455_s0 + $0x18] sm:$0xff]  ;;  %v17_v40 = vld [vmem:[%s1455_s0 + $0x10] sm:$0xff]  ;;  %v1112_v42 = vld [vmem:[%s1454_s1 + $0x1c0] sm:$0xff]  }
   0xe   :  { %996 = vmatprep.subr.bf16.mxu1 %v1092_v14  ;;  %v28_v38 = vpack.c.bf16 %v18_v37, %v18_v37  ;;  %v27_v41 = vpack.c.bf16 %v17_v40, %v17_v40  ;;  %v1113_v43 = vld [vmem:[%s1454_s1 + $0x180] sm:$0xff]   ;;  %v1114_v44 = vld [vmem:[%s1454_s1 + $0x148] sm:$0xff]   ;;  %v1118_v48 = vld [vmem:[%s1454_s1 + $0x150] sm:$0xff]  }
   0xf   :  { %975 = vmatpush3.bf16.msra.mxu0 %v1091_v13  ;;  %v1115_v45 = vld [vmem:[%s1454_s1 + $0x108] sm:$0xff]   ;;  %v1119_v49 = vld [vmem:[%s1454_s1 + $0x110] sm:$0xff]   ;;  %v1122_v52 = vld [vmem:[%s1454_s1 + $0x158] sm:$0xff]  }
  0x10   :  { %976 = vmatprep.subr.bf16.mxu0 %v1094_v16  ;;  %754 = vmatprep.mubr.bf16.mxu1 %v28_v38  ;;  %v1116_v46 = vld [vmem:[%s1454_s1 + $0x1c8] sm:$0xff]   ;;  %v1120_v50 = vld [vmem:[%s1454_s1 + $0x1d0] sm:$0xff]   ;;  %v1123_v53 = vld [vmem:[%s1454_s1 + $0x118] sm:$0xff]  }
  0x11   :  { %997 = vmatpush3.bf16.msra.mxu1 %v1093_v15  ;;  %v1117_v47 = vld [vmem:[%s1454_s1 + $0x188] sm:$0xff]   ;;  %v1121_v51 = vld [vmem:[%s1454_s1 + $0x190] sm:$0xff]   ;;  %v1124_v54 = vld [vmem:[%s1454_s1 + $0x1d8] sm:$0xff]  }
  0x12   :  { %998 = vmatprep.subr.bf16.mxu1 %v1096_v18  ;;  %v1125_v55 = vld [vmem:[%s1454_s1 + $0x198] sm:$0xff]   ;;  %v1126_v56 = vld [vmem:[%s1454_s1 + $0x160] sm:$0xff]   ;;  %v1130_v60 = vld [vmem:[%s1454_s1 + $0x168] sm:$0xff]  }
  0x13   :  { %977 = vmatpush3.bf16.msra.mxu0 %v1095_v17  ;;  %v1127_v57 = vld [vmem:[%s1454_s1 + $0x120] sm:$0xff]   ;;  %v1131_v61 = vld [vmem:[%s1454_s1 + $0x128] sm:$0xff]   ;;  %v1134_v0 = vld [vmem:[%s1454_s1 + $0x170] sm:$0xff]  }
  0x14   :  { %978 = vmatprep.subr.bf16.mxu0 %v1098_v20  ;;  %v1128_v58 = vld [vmem:[%s1454_s1 + $0x1e0] sm:$0xff]   ;;  %v1132_v62 = vld [vmem:[%s1454_s1 + $0x1e8] sm:$0xff]   ;;  %v1135_v1 = vld [vmem:[%s1454_s1 + $0x130] sm:$0xff]  }
  0x15   :  { %999 = vmatpush3.bf16.msra.mxu1 %v1097_v19  ;;  %v1129_v59 = vld [vmem:[%s1454_s1 + $0x1a0] sm:$0xff]   ;;  %v1133_v63 = vld [vmem:[%s1454_s1 + $0x1a8] sm:$0xff]   ;;  %v1136_v2 = vld [vmem:[%s1454_s1 + $0x1f0] sm:$0xff]  }
  0x16   :  { %1000 = vmatprep.subr.bf16.mxu1 %v1100_v22  ;;  %v1137_v3 = vld [vmem:[%s1454_s1 + $0x1b0] sm:$0xff]   ;;  %v1138_v4 = vld [vmem:[%s1454_s1 + $0x178] sm:$0xff]   ;;  %v20_v7 = vld [vmem:[%s1455_s0 + $0x28] sm:$0xff] }
  0x17   :  { %979 = vmatpush3.bf16.msra.mxu0 %v1099_v21  ;;  %v1139_v5 = vld [vmem:[%s1454_s1 + $0x138] sm:$0xff]   ;;  %v30_v8 = vpack.c.bf16 %v20_v7, %v20_v7  ;;  %v19_v10 = vld [vmem:[%s1455_s0 + $0x20] sm:$0xff]  ;;  %v21_v16 = vld [vmem:[%s1455_s0 + $0x30] sm:$0xff] }
  0x18   :  { %980 = vmatprep.subr.bf16.mxu0 %v1102_v24  ;;  %v1140_v6 = vld [vmem:[%s1454_s1 + $0x1f8] sm:$0xff]   ;;  %v29_v11 = vpack.c.bf16 %v19_v10, %v19_v10  ;;  %v1142_v12 = vld [vmem:[%s1454_s1 + $0x240] sm:$0xff]   ;;  %v31_v17 = vpack.c.bf16 %v21_v16, %v21_v16  ;;  %v1144_v18 = vld [vmem:[%s1454_s1 + $0x248] sm:$0xff]  }
  0x19   :  { %1001 = vmatpush3.bf16.msra.mxu1 %v1101_v23  ;;  %v1141_v9 = vld [vmem:[%s1454_s1 + $0x1b8] sm:$0xff]   ;;  %v1143_v15 = vld [vmem:[%s1454_s1 + $0x200] sm:$0xff]   ;;  %v1145_v19 = vld [vmem:[%s1454_s1 + $0x208] sm:$0xff]  }
  0x1a   :  { %1002 = vmatprep.subr.bf16.mxu1 %v1104_v26  ;;  %v22_v13 = vld [vmem:[%s1455_s0 + $0x38] sm:$0xff]  ;;  %v1146_v20 = vld [vmem:[%s1454_s1 + $0x250] sm:$0xff]   ;;  %v1150_v24 = vld [vmem:[%s1454_s1 + $0x260] sm:$0xff]  }
  0x1b   :  { %981 = vmatpush3.bf16.msra.mxu0 %v1103_v25  ;;  %v32_v14 = vpack.c.bf16 %v22_v13, %v22_v13  ;;  %v1147_v21 = vld [vmem:[%s1454_s1 + $0x210] sm:$0xff]   ;;  %v1148_v22 = vld [vmem:[%s1454_s1 + $0x258] sm:$0xff]   ;;  %v1151_v25 = vld [vmem:[%s1454_s1 + $0x220] sm:$0xff]  }
  0x1c   :  { %982 = vmatprep.subr.bf16.mxu0 %v1106_v28  ;;  %v1149_v23 = vld [vmem:[%s1454_s1 + $0x218] sm:$0xff]   ;;  %v24_v26 = vld [vmem:[%s1455_s0 + $0x48] sm:$0xff]  ;;  %v1155_v31 = vld [vmem:[%s1454_s1 + $0x230] sm:$0xff]  }
  0x1d   :  { %1003 = vmatpush3.bf16.msra.mxu1 %v1105_v27  ;;  %v1152_v27 = vld [vmem:[%s1454_s1 + $0x268] sm:$0xff]   ;;  %v34_v28 = vpack.c.bf16 %v24_v26, %v24_v26  ;;  %v1156_v32 = vld [vmem:[%s1454_s1 + $0x278] sm:$0xff]   ;;  %v23_v34 = vld [vmem:[%s1455_s0 + $0x40] sm:$0xff] }
  0x1e   :  { %1004 = vmatprep.subr.bf16.mxu1 %v1108_v30  ;;  %v1154_v30 = vld [vmem:[%s1454_s1 + $0x270] sm:$0xff]   ;;  %v887_v37 = vld [vmem:[%s1456_s2] ss:$0 sm:$0xff] }
  0x1f   :  { %983 = vmatpush3.bf16.msra.mxu0 %v1107_v29  ;;  %v1153_v29 = vld [vmem:[%s1454_s1 + $0x228] sm:$0xff]  }
  0x20   :  { %1012 = vmatprep.subr.bf16.mxu0 %v1110_v36 }
  0x21   :  { %1005 = vmatpush3.bf16.msra.mxu1 %v1109_v33  ;;  %v1157_v33 = vld [vmem:[%s1454_s1 + $0x238] sm:$0xff]  }
  0x22   :  { %715 = vmatmul.mubr.bf16.vlgmr.msra.gmra.mrb[0].mxu0 %v25_v35  ;;  %1034 = vmatprep.subr.bf16.mxu1 %v1112_v42  ;;  %v33_v35 = vpack.c.bf16 %v23_v34, %v23_v34 }
  0x23   :  { %1013 = vmatpush3.bf16.msra.mxu0 %v1111_v39  ;;  %794 = vmatprep.mubr.bf16.mxu0 %v30_v8 }
  0x24   :  { %755 = vmatmul.mubr.bf16.vlgmr.msra.gmra.mrb[0].mxu1 %v27_v41  ;;  %1014 = vmatprep.subr.bf16.mxu0 %v1114_v44 }
  0x25   :  { %1035 = vmatpush3.bf16.msra.mxu1 %v1113_v43  ;;  %834 = vmatprep.mubr.bf16.mxu1 %v32_v14 }
  0x26   :  { %1036 = vmatprep.subr.bf16.mxu1 %v1116_v46 }
  0x27   :  { %1015 = vmatpush3.bf16.msra.mxu0 %v1115_v45 }
  0x28   :  { %1016 = vmatprep.subr.bf16.mxu0 %v1118_v48 }
  0x29   :  { %1037 = vmatpush3.bf16.msra.mxu1 %v1117_v47 }
  0x2a   :  { %1038 = vmatprep.subr.bf16.mxu1 %v1120_v50 }
  0x2b   :  { %1017 = vmatpush3.bf16.msra.mxu0 %v1119_v49 }
  0x2c   :  { %1018 = vmatprep.subr.bf16.mxu0 %v1122_v52 }
  0x2d   :  { %1039 = vmatpush3.bf16.msra.mxu1 %v1121_v51 }
  0x2e   :  { %1040 = vmatprep.subr.bf16.mxu1 %v1124_v54 }
  0x2f   :  { %1019 = vmatpush3.bf16.msra.mxu0 %v1123_v53 }
  0x30   :  { %1020 = vmatprep.subr.bf16.mxu0 %v1126_v56 }
  0x31   :  { %1041 = vmatpush3.bf16.msra.mxu1 %v1125_v55 }
  0x32   :  { %1042 = vmatprep.subr.bf16.mxu1 %v1128_v58 }
  0x33   :  { %1021 = vmatpush3.bf16.msra.mxu0 %v1127_v57 }
  0x34   :  { %1022 = vmatprep.subr.bf16.mxu0 %v1130_v60 }
  0x35   :  { %1043 = vmatpush3.bf16.msra.mxu1 %v1129_v59 }
  0x36   :  { %1044 = vmatprep.subr.bf16.mxu1 %v1132_v62 }
  0x37   :  { %1023 = vmatpush3.bf16.msra.mxu0 %v1131_v61 }
  0x38   :  { %1024 = vmatprep.subr.bf16.mxu0 %v1134_v0 }
  0x39   :  { %1045 = vmatpush3.bf16.msra.mxu1 %v1133_v63 }
  0x3a   :  { %1046 = vmatprep.subr.bf16.mxu1 %v1136_v2 }
  0x3b   :  { %1025 = vmatpush3.bf16.msra.mxu0 %v1135_v1 }
  0x3c   :  { %1026 = vmatprep.subr.bf16.mxu0 %v1138_v4 }
  0x3d   :  { %1047 = vmatpush3.bf16.msra.mxu1 %v1137_v3 }
  0x3e   :  { %1048 = vmatprep.subr.bf16.mxu1 %v1140_v6 }
  0x3f   :  { %1027 = vmatpush3.bf16.msra.mxu0 %v1139_v5 }
  0x40   :  { %1056 = vmatprep.subr.bf16.mxu0 %v1142_v12 }
  0x41   :  { %1049 = vmatpush3.bf16.msra.mxu1 %v1141_v9 }
  0x42   :  { %795 = vmatmul.mubr.bf16.vlgmr.msra.gmra.mrb[4].mxu0 %v29_v11 }
  0x43   :  { %1057 = vmatpush3.bf16.msra.mxu0 %v1143_v15  ;;  %874 = vmatprep.mubr.bf16.mxu0 %v34_v28 }
  0x44   :  { %835 = vmatmul.mubr.bf16.vlgmr.msra.gmra.mrb[4].mxu1 %v31_v17  ;;  %1058 = vmatprep.subr.bf16.mxu0 %v1144_v18 }
  0x47   :  { %1059 = vmatpush3.bf16.msra.mxu0 %v1145_v19 }
  0x48   :  { %1060 = vmatprep.subr.bf16.mxu0 %v1146_v20 }
  0x4b   :  { %1061 = vmatpush3.bf16.msra.mxu0 %v1147_v21 }
  0x4c   :  { %1062 = vmatprep.subr.bf16.mxu0 %v1148_v22 }
  0x4f   :  { %1063 = vmatpush3.bf16.msra.mxu0 %v1149_v23 }
  0x50   :  { %1064 = vmatprep.subr.bf16.mxu0 %v1150_v24 }
  0x53   :  { %1065 = vmatpush3.bf16.msra.mxu0 %v1151_v25 }
  0x54   :  { %1066 = vmatprep.subr.bf16.mxu0 %v1152_v27 }
  0x57   :  { %1067 = vmatpush3.bf16.msra.mxu0 %v1153_v29 }
  0x58   :  { %1068 = vmatprep.subr.bf16.mxu0 %v1154_v30 }
  0x5b   :  { %1069 = vmatpush3.bf16.msra.mxu0 %v1155_v31 }
  0x5c   :  { %1070 = vmatprep.subr.bf16.mxu0 %v1156_v32 }
  0x5f   :  { %1071 = vmatpush3.bf16.msra.mxu0 %v1157_v33 }
  0x62   :  { %875 = vmatmul.mubr.bf16.vlgmr.msra.gmra.mrb[8].mxu0 %v33_v35 }
  0xf5   :  { %v984_v36 = vpop.f32.mrb[0].mxu0 }
  0xf6   :  { %v985_v38 = vpop.f32.mrb[1].mxu0 }
  0xf7   :  { %v986_v39 = vadd.f32 %v985_v38, %v984_v36  ;;  %v987_v40 = vpop.f32.mrb[2].mxu0  ;;  %v1006_v41 = vpop.f32.mrb[0].mxu1 }
  0xf8   :  { %v988_v42 = vpop.f32.mrb[3].mxu0  ;;  %v1007_v44 = vpop.f32.mrb[1].mxu1 }
  0xf9   :  { %v717_v43 = vadd.f32 %v986_v39, %v887_v37  ;;  %v1008_v45 = vadd.f32 %v1007_v44, %v1006_v41  ;;  %v1009_v46 = vpop.f32.mrb[2].mxu1 }
  0xfa   :  { %v1010_v47 = vpop.f32.mrb[3].mxu1 }
  0xfb   :  { %v757_v48 = vadd.f32 %v1008_v45, %v717_v43 }
 0x115   :  { %v1028_v49 = vpop.f32.mrb[4].mxu0 }
 0x116   :  { %v1029_v50 = vpop.f32.mrb[5].mxu0 }
 0x117   :  { %v1030_v51 = vadd.f32 %v1029_v50, %v1028_v49  ;;  %v1031_v52 = vpop.f32.mrb[6].mxu0  ;;  %v1050_v53 = vpop.f32.mrb[4].mxu1 }
 0x118   :  { %v1032_v54 = vpop.f32.mrb[7].mxu0  ;;  %v1051_v56 = vpop.f32.mrb[5].mxu1 }
 0x119   :  { %v797_v55 = vadd.f32 %v1030_v51, %v757_v48  ;;  %v1052_v57 = vadd.f32 %v1051_v56, %v1050_v53  ;;  %v1053_v58 = vpop.f32.mrb[6].mxu1 }
 0x11a   :  { %v1054_v59 = vpop.f32.mrb[7].mxu1 }
 0x11b   :  { %v837_v60 = vadd.f32 %v1052_v57, %v797_v55 }
 0x135   :  { %v1072_v61 = vpop.f32.mrb[8].mxu0 }
 0x136   :  { %v1073_v62 = vpop.f32.mrb[9].mxu0 }
 0x137   :  { %v1074_v63 = vadd.f32 %v1073_v62, %v1072_v61  ;;  %v1075_v0 = vpop.f32.mrb[10].mxu0 }
 0x138   :  { %v1076_v1 = vpop.f32.mrb[11].mxu0 }
 0x139   :  { %v877_v2 = vadd.f32 %v1074_v63, %v837_v60 }
 0x13b   :  { %882 = vst [vmem:[%s1457_s3] sm:$0xff] %v877_v2 }

// kernel: model_forward.16
= control target key start
LH: loop header
LB: loop body
LE: loop exit
PB: predicated region body
PF: predicated region fallthrough
CT: control target
= control target key end

     0   :  { %v520_v36 = vmov 0   ;;  %v99_v60 = vlaneseq  ;;  %s696_s0 = inlined_call_operand.vmem [shape: f32[16,128], index: 0, kind: input, shape index: {}]   ;;  %s697_s3 = inlined_call_operand.vmem [shape: bf16[128,512], index: 3, kind: input, shape index: {}]   ;;  %s698_s1 = inlined_call_operand.vmem [shape: f32[1,128], index: 1, kind: input, shape index: {}]   ;;  %s699_s2 = inlined_call_operand.vmem [shape: f32[1,128], index: 2, kind: input, shape index: {}]   ;;  %s700_s4 = inlined_call_operand.vmem [shape: f32[1,512], index: 4, kind: input, shape index: {}]   ;;  %s701_s5 = inlined_call_operand.vmem [shape: f32[16,512], index: 5, kind: output, shape index: {}]  }
   0x1   :  { %v21_v0 = vld [vmem:[%s696_s0] sm:$0xff]  ;;  %v22_v1 = vld [vmem:[%s696_s0 + $0x8] sm:$0xff]  ;;  %311 = vmatprep.mubr.bf16.mxu0 %v520_v36  ;;  %354 = vmatprep.mubr.bf16.mxu1 %v520_v36 }
   0x2   :  { %23 = vadd.xlane.f32.xlu0 %v21_v0  ;;  %v452_v2 = vld [vmem:[%s697_s3 + $0x4] ss:$16 sps:$4 sm:$0xff]   ;;  %v454_v3 = vld [vmem:[%s697_s3 + $0xc] ss:$16 sps:$4 sm:$0xff]   ;;  %v456_v4 = vld [vmem:[%s697_s3] ss:$16 sps:$4 sm:$0xff]  }
   0x3   :  { %279 = vmatprep.subr.bf16.mxu0 %v452_v2  ;;  %v457_v5 = vld [vmem:[%s697_s3 + $0x8] ss:$16 sps:$4 sm:$0xff]   ;;  %322 = vmatprep.subr.bf16.mxu1 %v454_v3  ;;  %v458_v6 = vld [vmem:[%s697_s3 + $0x24] ss:$16 sps:$4 sm:$0xff]   ;;  %v460_v7 = vld [vmem:[%s697_s3 + $0x2c] ss:$16 sps:$4 sm:$0xff]  }
   0x4   :  { %280 = vmatpush1.bf16.msra.mxu0 %v456_v4  ;;  %323 = vmatpush1.bf16.msra.mxu1 %v457_v5  ;;  %v462_v16 = vld [vmem:[%s697_s3 + $0x20] ss:$16 sps:$4 sm:$0xff]   ;;  %v463_v17 = vld [vmem:[%s697_s3 + $0x28] ss:$16 sps:$4 sm:$0xff]   ;;  %v464_v18 = vld [vmem:[%s697_s3 + $0x44] ss:$16 sps:$4 sm:$0xff]  }
   0x5   :  { %281 = vmatprep.subr.bf16.mxu0 %v458_v6  ;;  %324 = vmatprep.subr.bf16.mxu1 %v460_v7  ;;  %v466_v19 = vld [vmem:[%s697_s3 + $0x4c] ss:$16 sps:$4 sm:$0xff]   ;;  %v468_v20 = vld [vmem:[%s697_s3 + $0x40] ss:$16 sps:$4 sm:$0xff]   ;;  %v469_v21 = vld [vmem:[%s697_s3 + $0x48] ss:$16 sps:$4 sm:$0xff]  }
   0x6   :  { %25 = vadd.xlane.f32.xlu0 %v22_v1  ;;  %v470_v22 = vld [vmem:[%s697_s3 + $0x64] ss:$16 sps:$4 sm:$0xff]   ;;  %v472_v23 = vld [vmem:[%s697_s3 + $0x6c] ss:$16 sps:$4 sm:$0xff]   ;;  %v474_v24 = vld [vmem:[%s697_s3 + $0x60] ss:$16 sps:$4 sm:$0xff]  }
   0x7   :  { %v475_v25 = vld [vmem:[%s697_s3 + $0x68] ss:$16 sps:$4 sm:$0xff]   ;;  %v476_v26 = vld [vmem:[%s697_s3 + $0x84] ss:$16 sps:$4 sm:$0xff]   ;;  %v478_v27 = vld [vmem:[%s697_s3 + $0x8c] ss:$16 sps:$4 sm:$0xff]  }
   0x8   :  { %282 = vmatpush1.bf16.msra.mxu0 %v462_v16  ;;  %325 = vmatpush1.bf16.msra.mxu1 %v463_v17  ;;  %v480_v28 = vld [vmem:[%s697_s3 + $0x80] ss:$16 sps:$4 sm:$0xff]   ;;  %v481_v29 = vld [vmem:[%s697_s3 + $0x88] ss:$16 sps:$4 sm:$0xff]   ;;  %v482_v30 = vld [vmem:[%s697_s3 + $0xa4] ss:$16 sps:$4 sm:$0xff]  }
   0x9   :  { %283 = vmatprep.subr.bf16.mxu0 %v464_v18  ;;  %326 = vmatprep.subr.bf16.mxu1 %v466_v19  ;;  %v484_v31 = vld [vmem:[%s697_s3 + $0xac] ss:$16 sps:$4 sm:$0xff]   ;;  %v486_v32 = vld [vmem:[%s697_s3 + $0xa0] ss:$16 sps:$4 sm:$0xff]   ;;  %v487_v33 = vld [vmem:[%s697_s3 + $0xa8] ss:$16 sps:$4 sm:$0xff]  }
   0xa   :  { %v488_v34 = vld [vmem:[%s697_s3 + $0xc4] ss:$16 sps:$4 sm:$0xff]   ;;  %v490_v35 = vld [vmem:[%s697_s3 + $0xcc] ss:$16 sps:$4 sm:$0xff]   ;;  %v492_v37 = vld [vmem:[%s697_s3 + $0xc0] ss:$16 sps:$4 sm:$0xff]  }
   0xb   :  { %v493_v38 = vld [vmem:[%s697_s3 + $0xc8] ss:$16 sps:$4 sm:$0xff]   ;;  %v494_v39 = vld [vmem:[%s697_s3 + $0xe4] ss:$16 sps:$4 sm:$0xff]   ;;  %v496_v40 = vld [vmem:[%s697_s3 + $0xec] ss:$16 sps:$4 sm:$0xff]  }
   0xc   :  { %284 = vmatpush1.bf16.msra.mxu0 %v468_v20  ;;  %327 = vmatpush1.bf16.msra.mxu1 %v469_v21  ;;  %v498_v41 = vld [vmem:[%s697_s3 + $0xe0] ss:$16 sps:$4 sm:$0xff]   ;;  %v499_v42 = vld [vmem:[%s697_s3 + $0xe8] ss:$16 sps:$4 sm:$0xff]   ;;  %v100_v61 = vshrl.u32 %v99_v60, 7 }
   0xd   :  { %285 = vmatprep.subr.bf16.mxu0 %v470_v22  ;;  %328 = vmatprep.subr.bf16.mxu1 %v472_v23  ;;  %v417_v51 = vld [vmem:[%s698_s1] ss:$0 sm:$0xff] }
   0xe   :  { %v418_v55 = vld [vmem:[%s699_s2] ss:$0 sm:$0xff]  ;;  %v101_v62 = vsub.s32 0, %v100_v61  ;;  %v109_v63 = vsub.s32 2, %v100_v61  ;;  %v113_v2 = vsub.s32 3, %v100_v61 }
  0x10   :  { %286 = vmatpush1.bf16.msra.mxu0 %v474_v24  ;;  %329 = vmatpush1.bf16.msra.mxu1 %v475_v25 }
  0x11   :  { %287 = vmatprep.subr.bf16.mxu0 %v476_v26  ;;  %330 = vmatprep.subr.bf16.mxu1 %v478_v27 }
  0x14   :  { %288 = vmatpush1.bf16.msra.mxu0 %v480_v28  ;;  %331 = vmatpush1.bf16.msra.mxu1 %v481_v29 }
  0x15   :  { %289 = vmatprep.subr.bf16.mxu0 %v482_v30  ;;  %332 = vmatprep.subr.bf16.mxu1 %v484_v31 }
  0x18   :  { %290 = vmatpush1.bf16.msra.mxu0 %v486_v32  ;;  %333 = vmatpush1.bf16.msra.mxu1 %v487_v33 }
  0x19   :  { %291 = vmatprep.subr.bf16.mxu0 %v488_v34  ;;  %334 = vmatprep.subr.bf16.mxu1 %v490_v35 }
  0x1c   :  { %292 = vmatpush1.bf16.msra.mxu0 %v492_v37  ;;  %335 = vmatpush1.bf16.msra.mxu1 %v493_v38 }
  0x1d   :  { %293 = vmatprep.subr.bf16.mxu0 %v494_v39  ;;  %336 = vmatprep.subr.bf16.mxu1 %v496_v40 }
  0x20   :  { %294 = vmatpush1.bf16.msra.mxu0 %v498_v41  ;;  %337 = vmatpush1.bf16.msra.mxu1 %v499_v42 }
  0x8f   :  { %v24_v8 = vpop.xlane.xlu0 %23 }
  0x90   :  { %v28_v9 = vmul.f32 0.0078125, %v24_v8 }
  0x92   :  { %v575_v10 = vsub.f32 %v21_v0, %v28_v9  ;;  %v97_v0 = vld [vmem:[%s700_s4] sm:$0xf] }
  0x93   :  { %v26_v11 = vpop.xlane.xlu0 %25  ;;  %v102_v3 = vrot.slane %v97_v0, %v101_v62  ;;  %v110_v4 = vrot.slane %v97_v0, %v109_v63  ;;  %v114_v6 = vrot.slane %v97_v0, %v113_v2 }
  0x94   :  { %v29_v12 = vmul.f32 0.0078125, %v26_v11  ;;  %v32_v13 = vmul.f32 %v575_v10, %v575_v10 }
  0x96   :  { %v579_v14 = vsub.f32 %v22_v1, %v29_v12  ;;  %34 = vadd.xlane.f32.xlu1 %v32_v13  ;;  %v105_v1 = vsub.s32 1, %v100_v61 }
  0x98   :  { %v33_v15 = vmul.f32 %v579_v14, %v579_v14  ;;  %v106_v5 = vrot.slane %v97_v0, %v105_v1 }
  0x9a   :  { %36 = vadd.xlane.f32.xlu1 %v33_v15 }
 0x123   :  { %v35_v43 = vpop.xlane.xlu1 %34 }
 0x124   :  { %v38_v44 = vmul.f32 0.0078125, %v35_v43 }
 0x126   :  { %v40_v45 = vadd.f32 1e-06, %v38_v44 }
 0x127   :  { %v37_v46 = vpop.xlane.xlu1 %36 }
 0x128   :  { %500 = vrsqrt.f32 %v40_v45  ;;  %v39_v47 = vmul.f32 0.0078125, %v37_v46 }
 0x12a   :  { %v41_v48 = vadd.f32 1e-06, %v39_v47 }
 0x12c   :  { %502 = vrsqrt.f32 %v41_v48 }
 0x132   :  { %v501_v49 = vpop.eup %500 }
 0x133   :  { %v44_v50 = vmul.f32 %v501_v49, %v575_v10 }
 0x135   :  { %v53_v54 = vmul.f32 %v417_v51, %v44_v50 }
 0x136   :  { %v503_v52 = vpop.eup %502 }
 0x137   :  { %v45_v53 = vmul.f32 %v503_v52, %v579_v14  ;;  %v62_v57 = vadd.f32 %v418_v55, %v53_v54 }
 0x139   :  { %v54_v56 = vmul.f32 %v417_v51, %v45_v53 }
 0x13b   :  { %v63_v58 = vadd.f32 %v418_v55, %v54_v56 }
 0x13d   :  { %v64_v59 = vpack.c.bf16 %v63_v58, %v62_v57 }
 0x13f   :  { %312 = vmatmul.mubr.bf16.vlgmr.msra.gmra.mrb[0].mxu0 %v64_v59  ;;  %355 = vmatmul.mubr.bf16.vlgmr.msra.gmra.mrb[0].mxu1 %v64_v59 }
 0x212   :  { %v313_v7 = vpop.f32.mrb[0].mxu0  ;;  %v356_v8 = vpop.f32.mrb[0].mxu1 }
 0x213   :  { %v314_v9 = vadd.f32 %v313_v7, %v102_v3  ;;  %v357_v10 = vadd.f32 %v356_v8, %v110_v4  ;;  %v315_v11 = vpop.f32.mrb[1].mxu0  ;;  %v358_v12 = vpop.f32.mrb[1].mxu1 }
 0x214   :  { %v316_v13 = vadd.f32 %v315_v11, %v106_v5  ;;  %v359_v14 = vadd.f32 %v358_v12, %v114_v6  ;;  %v317_v15 = vpop.f32.mrb[2].mxu0  ;;  %v360_v16 = vpop.f32.mrb[2].mxu1 }
 0x215   :  { %v373_v17 = vmul.f32 0.70710677, %v314_v9  ;;  %v375_v18 = vmul.f32 0.70710677, %v357_v10  ;;  %v318_v21 = vadd.f32 %v317_v15, %v102_v3  ;;  %v361_v22 = vadd.f32 %v360_v16, %v110_v4  ;;  %v319_v23 = vpop.f32.mrb[3].mxu0  ;;  %v362_v24 = vpop.f32.mrb[3].mxu1 }
 0x216   :  { %v374_v19 = vmul.f32 0.70710677, %v316_v13  ;;  %v376_v20 = vmul.f32 0.70710677, %v359_v14  ;;  %v320_v25 = vadd.f32 %v319_v23, %v106_v5  ;;  %v363_v26 = vadd.f32 %v362_v24, %v114_v6 }
 0x217   :  { %504 = verf.f32 %v373_v17  ;;  %v377_v27 = vmul.f32 0.70710677, %v318_v21  ;;  %v379_v28 = vmul.f32 0.70710677, %v361_v22  ;;  %v365_v33 = vmul.f32 0.5, %v314_v9 }
 0x218   :  { %506 = verf.f32 %v375_v18  ;;  %v378_v29 = vmul.f32 0.70710677, %v320_v25  ;;  %v380_v30 = vmul.f32 0.70710677, %v363_v26  ;;  %v367_v36 = vmul.f32 0.5, %v357_v10 }
 0x219   :  { %508 = verf.f32 %v374_v19  ;;  %v366_v40 = vmul.f32 0.5, %v316_v13  ;;  %v368_v44 = vmul.f32 0.5, %v359_v14  ;;  %v369_v48 = vmul.f32 0.5, %v318_v21 }
 0x21a   :  { %510 = verf.f32 %v376_v20  ;;  %v371_v52 = vmul.f32 0.5, %v361_v22  ;;  %v370_v56 = vmul.f32 0.5, %v320_v25  ;;  %v372_v59 = vmul.f32 0.5, %v363_v26 }
 0x21b   :  { %512 = verf.f32 %v377_v27 }
 0x21c   :  { %514 = verf.f32 %v379_v28 }
 0x21d   :  { %516 = verf.f32 %v378_v29 }
 0x21e   :  { %518 = verf.f32 %v380_v30 }
 0x221   :  { %v505_v31 = vpop.eup %504 }
 0x222   :  { %v507_v32 = vpop.eup %506  ;;  %v389_v34 = vadd.f32 1.0, %v505_v31 }
 0x223   :  { %v509_v35 = vpop.eup %508  ;;  %v391_v37 = vadd.f32 1.0, %v507_v32 }
 0x224   :  { %v511_v38 = vpop.eup %510  ;;  %v397_v39 = vmul.f32 %v389_v34, %v365_v33  ;;  %v390_v41 = vadd.f32 1.0, %v509_v35 }
 0x225   :  { %v513_v42 = vpop.eup %512  ;;  %v399_v43 = vmul.f32 %v391_v37, %v367_v36  ;;  %v392_v45 = vadd.f32 1.0, %v511_v38 }
 0x226   :  { %v515_v46 = vpop.eup %514  ;;  %405 = vst [vmem:[%s701_s5] sm:$0xff] %v397_v39  ;;  %v398_v47 = vmul.f32 %v390_v41, %v366_v40  ;;  %v393_v49 = vadd.f32 1.0, %v513_v42 }
 0x227   :  { %v517_v50 = vpop.eup %516  ;;  %407 = vst [vmem:[%s701_s5 + $0x10] sm:$0xff] %v399_v43  ;;  %v400_v51 = vmul.f32 %v392_v45, %v368_v44  ;;  %v395_v53 = vadd.f32 1.0, %v515_v46 }
 0x228   :  { %v519_v54 = vpop.eup %518  ;;  %406 = vst [vmem:[%s701_s5 + $0x8] sm:$0xff] %v398_v47  ;;  %v401_v55 = vmul.f32 %v393_v49, %v369_v48  ;;  %v394_v57 = vadd.f32 1.0, %v517_v50 }
 0x229   :  { %408 = vst [vmem:[%s701_s5 + $0x18] sm:$0xff] %v400_v51  ;;  %v403_v58 = vmul.f32 %v395_v53, %v371_v52  ;;  %v396_v60 = vadd.f32 1.0, %v519_v54 }
 0x22a   :  { %409 = vst [vmem:[%s701_s5 + $0x20] sm:$0xff] %v401_v55  ;;  %v402_v61 = vmul.f32 %v394_v57, %v370_v56 }
 0x22b   :  { %411 = vst [vmem:[%s701_s5 + $0x30] sm:$0xff] %v403_v58  ;;  %v404_v62 = vmul.f32 %v396_v60, %v372_v59 }
 0x22c   :  { %410 = vst [vmem:[%s701_s5 + $0x28] sm:$0xff] %v402_v61 }
 0x22d   :  { %412 = vst [vmem:[%s701_s5 + $0x38] sm:$0xff] %v404_v62 }

// kernel: model_forward.17
= control target key start
LH: loop header
LB: loop body
LE: loop exit
PB: predicated region body
PF: predicated region fallthrough
CT: control target
= control target key end

     0   :  { %s654_s1 = inlined_call_operand.vmem [shape: bf16[512,128], index: 1, kind: input, shape index: {}]   ;;  %s655_s0 = inlined_call_operand.vmem [shape: f32[16,512], index: 0, kind: input, shape index: {}]   ;;  %s656_s2 = inlined_call_operand.vmem [shape: f32[1,128], index: 2, kind: input, shape index: {}]   ;;  %s657_s3 = inlined_call_operand.vmem [shape: f32[16,128], index: 3, kind: input, shape index: {}]   ;;  %s658_s4 = inlined_call_operand.vmem [shape: f32[16,128], index: 4, kind: output, shape index: {}]  }
   0x1   :  { %v462_v0 = vld [vmem:[%s654_s1 + $0x40] sm:$0xff]   ;;  %v466_v4 = vld [vmem:[%s654_s1 + $0x48] sm:$0xff]   ;;  %v470_v8 = vld [vmem:[%s654_s1 + $0x50] sm:$0xff]  }
   0x2   :  { %v463_v1 = vld [vmem:[%s654_s1 + $0xc0] sm:$0xff]   ;;  %418 = vmatprep.subr.bf16.mxu0 %v462_v0  ;;  %v467_v5 = vld [vmem:[%s654_s1 + $0xc8] sm:$0xff]   ;;  %v471_v9 = vld [vmem:[%s654_s1 + $0xd0] sm:$0xff]  }
   0x3   :  { %v464_v2 = vld [vmem:[%s654_s1] sm:$0xff]   ;;  %440 = vmatprep.subr.bf16.mxu1 %v463_v1  ;;  %v468_v6 = vld [vmem:[%s654_s1 + $0x8] sm:$0xff]   ;;  %v472_v10 = vld [vmem:[%s654_s1 + $0x10] sm:$0xff]  }
   0x4   :  { %v465_v3 = vld [vmem:[%s654_s1 + $0x80] sm:$0xff]   ;;  %419 = vmatpush3.bf16.msra.mxu0 %v464_v2  ;;  %v469_v7 = vld [vmem:[%s654_s1 + $0x88] sm:$0xff]   ;;  %v473_v11 = vld [vmem:[%s654_s1 + $0x90] sm:$0xff]  }
   0x5   :  { %441 = vmatpush3.bf16.msra.mxu1 %v465_v3  ;;  %420 = vmatprep.subr.bf16.mxu0 %v466_v4  ;;  %v474_v12 = vld [vmem:[%s654_s1 + $0x58] sm:$0xff]   ;;  %v478_v16 = vld [vmem:[%s654_s1 + $0x60] sm:$0xff]   ;;  %v482_v20 = vld [vmem:[%s654_s1 + $0x68] sm:$0xff]  }
   0x6   :  { %442 = vmatprep.subr.bf16.mxu1 %v467_v5  ;;  %v475_v13 = vld [vmem:[%s654_s1 + $0xd8] sm:$0xff]   ;;  %v479_v17 = vld [vmem:[%s654_s1 + $0xe0] sm:$0xff]   ;;  %v483_v21 = vld [vmem:[%s654_s1 + $0xe8] sm:$0xff]  }
   0x7   :  { %v476_v14 = vld [vmem:[%s654_s1 + $0x18] sm:$0xff]   ;;  %v480_v18 = vld [vmem:[%s654_s1 + $0x20] sm:$0xff]   ;;  %v484_v22 = vld [vmem:[%s654_s1 + $0x28] sm:$0xff]  }
   0x8   :  { %421 = vmatpush3.bf16.msra.mxu0 %v468_v6  ;;  %v477_v15 = vld [vmem:[%s654_s1 + $0x98] sm:$0xff]   ;;  %v481_v19 = vld [vmem:[%s654_s1 + $0xa0] sm:$0xff]   ;;  %v485_v23 = vld [vmem:[%s654_s1 + $0xa8] sm:$0xff]  }
   0x9   :  { %443 = vmatpush3.bf16.msra.mxu1 %v469_v7  ;;  %422 = vmatprep.subr.bf16.mxu0 %v470_v8  ;;  %v486_v24 = vld [vmem:[%s654_s1 + $0x70] sm:$0xff]   ;;  %v490_v28 = vld [vmem:[%s654_s1 + $0x78] sm:$0xff]   ;;  %v19_v32 = vld [vmem:[%s655_s0 + $0x8] sm:$0xff] }
   0xa   :  { %444 = vmatprep.subr.bf16.mxu1 %v471_v9  ;;  %v487_v25 = vld [vmem:[%s654_s1 + $0xf0] sm:$0xff]   ;;  %v491_v29 = vld [vmem:[%s654_s1 + $0xf8] sm:$0xff]   ;;  %v23_v33 = vld [vmem:[%s655_s0 + $0x28] sm:$0xff] }
   0xb   :  { %v488_v26 = vld [vmem:[%s654_s1 + $0x30] sm:$0xff]   ;;  %v492_v30 = vld [vmem:[%s654_s1 + $0x38] sm:$0xff]   ;;  %v27_v35 = vpack.c.bf16 %v23_v33, %v19_v32  ;;  %v18_v37 = vld [vmem:[%s655_s0] sm:$0xff] }
   0xc   :  { %423 = vmatpush3.bf16.msra.mxu0 %v472_v10  ;;  %v489_v27 = vld [vmem:[%s654_s1 + $0xb0] sm:$0xff]   ;;  %v493_v31 = vld [vmem:[%s654_s1 + $0xb8] sm:$0xff]   ;;  %v22_v38 = vld [vmem:[%s655_s0 + $0x20] sm:$0xff] }
   0xd   :  { %445 = vmatpush3.bf16.msra.mxu1 %v473_v11  ;;  %424 = vmatprep.subr.bf16.mxu0 %v474_v12  ;;  %v21_v34 = vld [vmem:[%s655_s0 + $0x18] sm:$0xff]  ;;  %v26_v40 = vpack.c.bf16 %v22_v38, %v18_v37  ;;  %v20_v41 = vld [vmem:[%s655_s0 + $0x10] sm:$0xff]  ;;  %v385_v46 = vld [vmem:[%s656_s2] ss:$0 sm:$0xff] }
   0xe   :  { %446 = vmatprep.subr.bf16.mxu1 %v475_v13  ;;  %v25_v36 = vld [vmem:[%s655_s0 + $0x38] sm:$0xff]  ;;  %v24_v42 = vld [vmem:[%s655_s0 + $0x30] sm:$0xff]  ;;  %325 = vmatprep.mubr.bf16.mxu0 %v27_v35  ;;  %v375_v57 = vld [vmem:[%s657_s3] sm:$0xff] }
   0xf   :  { %v29_v39 = vpack.c.bf16 %v25_v36, %v21_v34  ;;  %v28_v43 = vpack.c.bf16 %v24_v42, %v20_v41  ;;  %v376_v61 = vld [vmem:[%s657_s3 + $0x8] sm:$0xff] }
  0x10   :  { %425 = vmatpush3.bf16.msra.mxu0 %v476_v14 }
  0x11   :  { %447 = vmatpush3.bf16.msra.mxu1 %v477_v15  ;;  %426 = vmatprep.subr.bf16.mxu0 %v478_v16 }
  0x12   :  { %448 = vmatprep.subr.bf16.mxu1 %v479_v17  ;;  %366 = vmatprep.mubr.bf16.mxu1 %v29_v39 }
  0x14   :  { %427 = vmatpush3.bf16.msra.mxu0 %v480_v18 }
  0x15   :  { %449 = vmatpush3.bf16.msra.mxu1 %v481_v19  ;;  %428 = vmatprep.subr.bf16.mxu0 %v482_v20 }
  0x16   :  { %450 = vmatprep.subr.bf16.mxu1 %v483_v21 }
  0x18   :  { %429 = vmatpush3.bf16.msra.mxu0 %v484_v22 }
  0x19   :  { %451 = vmatpush3.bf16.msra.mxu1 %v485_v23  ;;  %430 = vmatprep.subr.bf16.mxu0 %v486_v24 }
  0x1a   :  { %452 = vmatprep.subr.bf16.mxu1 %v487_v25 }
  0x1c   :  { %431 = vmatpush3.bf16.msra.mxu0 %v488_v26 }
  0x1d   :  { %453 = vmatpush3.bf16.msra.mxu1 %v489_v27  ;;  %432 = vmatprep.subr.bf16.mxu0 %v490_v28 }
  0x1e   :  { %454 = vmatprep.subr.bf16.mxu1 %v491_v29 }
  0x20   :  { %433 = vmatpush3.bf16.msra.mxu0 %v492_v30 }
  0x21   :  { %455 = vmatpush3.bf16.msra.mxu1 %v493_v31 }
  0x23   :  { %326 = vmatmul.mubr.bf16.vlgmr.msra.gmra.mrb[0].mxu0 %v26_v40 }
  0x24   :  { %367 = vmatmul.mubr.bf16.vlgmr.msra.gmra.mrb[0].mxu1 %v28_v43 }
  0xf6   :  { %v434_v44 = vpop.f32.mrb[0].mxu0 }
  0xf7   :  { %v456_v45 = vpop.f32.mrb[0].mxu1  ;;  %v435_v47 = vpop.f32.mrb[1].mxu0 }
  0xf8   :  { %v436_v48 = vadd.f32 %v435_v47, %v434_v44  ;;  %v457_v49 = vpop.f32.mrb[1].mxu1  ;;  %v437_v50 = vpop.f32.mrb[2].mxu0 }
  0xf9   :  { %v458_v51 = vadd.f32 %v457_v49, %v456_v45  ;;  %v459_v52 = vpop.f32.mrb[2].mxu1  ;;  %v438_v53 = vpop.f32.mrb[3].mxu0 }
  0xfa   :  { %v328_v54 = vadd.f32 %v436_v48, %v385_v46  ;;  %v439_v55 = vadd.f32 %v438_v53, %v437_v50  ;;  %v460_v56 = vpop.f32.mrb[3].mxu1 }
  0xfb   :  { %v461_v58 = vadd.f32 %v460_v56, %v459_v52 }
  0xfc   :  { %v369_v59 = vadd.f32 %v458_v51, %v328_v54  ;;  %v331_v60 = vadd.f32 %v439_v55, %v385_v46 }
  0xfe   :  { %v377_v62 = vadd.f32 %v375_v57, %v369_v59  ;;  %v372_v63 = vadd.f32 %v461_v58, %v331_v60 }
 0x100   :  { %379 = vst [vmem:[%s658_s4] sm:$0xff] %v377_v62  ;;  %v378_v0 = vadd.f32 %v376_v61, %v372_v63 }
 0x102   :  { %380 = vst [vmem:[%s658_s4 + $0x8] sm:$0xff] %v378_v0 }

// kernel: model_forward.23
= control target key start
LH: loop header
LB: loop body
LE: loop exit
PB: predicated region body
PF: predicated region fallthrough
CT: control target
= control target key end

     0   :  { %vm23_vm0 = vcmask 1041408   ;;  %s341_s0 = inlined_call_operand.vmem [shape: f32[2,128], index: 0, kind: input, shape index: {}]   ;;  %s342_s1 = inlined_call_operand.vmem [shape: f32[1,128], index: 1, kind: input, shape index: {}]   ;;  %s343_s2 = inlined_call_operand.vmem [shape: f32[1,128], index: 2, kind: input, shape index: {}]   ;;  %s344_s3 = inlined_call_operand.vmem [shape: bf16[128,128], index: 3, kind: input, shape index: {}]   ;;  %s345_s4 = inlined_call_operand.vmem [shape: f32[1,128], index: 4, kind: input, shape index: {}]   ;;  %s346_s5 = inlined_call_operand.hbm [shape: f32[2,128], index: 5, kind: output, shape index: {}]  }
   0x1   :  { %v22_v0 = vld [vmem:[%s341_s0] sm:$0x3] }
   0x2   :  { %v24_v1 = vsel %vm23_vm0, %v22_v0, 0.0 }
   0x3   :  { %25 = vadd.xlane.f32.xlu0 %v24_v1 }
   0x4   :  { %10 = vsyncpa [#allocation3], 0  ;;  %v224_v2 = vld [vmem:[%s344_s3] sm:$0xff]   ;;  %v258_v3 = vmov 0.0   ;;  %v225_v4 = vld [vmem:[%s344_s3 + $0x8] sm:$0xff]   ;;  %vm259_vm1 = vmmov 0  }
   0x5   :  { %201 = vmatprep.subr.bf16.mxu0 %v258_v3  ;;  %v226_v10 = vld [vmem:[%s344_s3 + $0x10] sm:$0xff]   ;;  %v227_v11 = vld [vmem:[%s344_s3 + $0x18] sm:$0xff]   ;;  %v228_v12 = vld [vmem:[%s344_s3 + $0x20] sm:$0xff]   ;;  %217 = vmatprep.mubr.msk.bf16.mxu0 %vm259_vm1, %v258_v3  ;;  %s260_s15 = smov [#allocation2]  }
   0x6   :  { %202 = vmatpush3.bf16.msra.mxu0 %v224_v2  ;;  %v229_v13 = vld [vmem:[%s344_s3 + $0x28] sm:$0xff]   ;;  %v230_v14 = vld [vmem:[%s344_s3 + $0x30] sm:$0xff]   ;;  %v231_v15 = vld [vmem:[%s344_s3 + $0x38] sm:$0xff]   ;;  %s173_s16 = sshll.u32 %s260_s15, 4  ;;  %s174_s16 = int_to_ptr.vmem [resolvable:$true] %s173_s16 }
   0x7   :  { %203 = vmatprep.subr.bf16.mxu0 %v258_v3  ;;  %v181_v20 = vld [vmem:[%s342_s1] ss:$0 sm:$0xff]  ;;  %s234_s1 = scalar_lea.vmem %s174_s16, 32  ;;  %p239_p1 = scmp.lt.s32.totalorder %s174_s16, %s174_s16 }
   0x8   :  { %v182_v22 = vld [vmem:[%s343_s2] ss:$0 sm:$0xff]  ;;  %p235_p0 = scmp.ne.s32.totalorder %s174_s16, %s234_s1  ;;  %p240_p2 = scmp.lt.s32.totalorder %s234_s1, %s234_s1 }
   0x9   :  { %v183_v26 = vld [vmem:[%s345_s4] ss:$0 sm:$0xff] }
   0xa   :  { %204 = vmatpush3.bf16.msra.mxu0 %v225_v4  ;;  %p241_p3 = por %p240_p2, %p239_p1 }
   0xb   :  { %205 = vmatprep.subr.bf16.mxu0 %v258_v3 }
   0xc   :  { %p242_p4 = pnand %p241_p3, %p235_p0 }
   0xe   :  { %206 = vmatpush3.bf16.msra.mxu0 %v226_v10 }
   0xf   :  { %207 = vmatprep.subr.bf16.mxu0 %v258_v3 }
  0x12   :  { %208 = vmatpush3.bf16.msra.mxu0 %v227_v11 }
  0x13   :  { %209 = vmatprep.subr.bf16.mxu0 %v258_v3 }
  0x16   :  { %210 = vmatpush3.bf16.msra.mxu0 %v228_v12 }
  0x17   :  { %211 = vmatprep.subr.bf16.mxu0 %v258_v3 }
  0x1a   :  { %212 = vmatpush3.bf16.msra.mxu0 %v229_v13 }
  0x1b   :  { %213 = vmatprep.subr.bf16.mxu0 %v258_v3 }
  0x1e   :  { %214 = vmatpush3.bf16.msra.mxu0 %v230_v14 }
  0x1f   :  { %215 = vmatprep.subr.bf16.mxu0 %v258_v3 }
  0x22   :  { %216 = vmatpush3.bf16.msra.mxu0 %v231_v15 }
  0x90   :  { %v26_v5 = vpop.xlane.xlu0 %25 }
  0x91   :  { %v28_v6 = vmul.f32 0.0078125, %v26_v5 }
  0x93   :  { %v29_v7 = vsub.f32 %v22_v0, %v28_v6 }
  0x95   :  { %v30_v8 = vmul.f32 %v29_v7, %v29_v7 }
  0x97   :  { %v31_v9 = vsel %vm23_vm0, %v30_v8, 0.0 }
  0x98   :  { %32 = vadd.xlane.f32.xlu0 %v31_v9 }
 0x125   :  { %v33_v16 = vpop.xlane.xlu0 %32 }
 0x126   :  { %v34_v17 = vmul.f32 0.0078125, %v33_v16 }
 0x128   :  { %v35_v18 = vadd.f32 1e-06, %v34_v17 }
 0x12a   :  { %232 = vrsqrt.f32 %v35_v18 }
 0x134   :  { %v233_v19 = vpop.eup %232 }
 0x135   :  { %v37_v21 = vmul.f32 %v233_v19, %v29_v7 }
 0x137   :  { %v45_v23 = vmul.f32 %v181_v20, %v37_v21 }
 0x139   :  { %v53_v24 = vadd.f32 %v182_v22, %v45_v23 }
 0x13b   :  { %v54_v25 = vpack.c.bf16 %v53_v24, %v53_v24 }
 0x13d   :  { %218 = vmatmul.mubr.bf16.vlgmr.msra.gmra.mrb[0].mxu0 %v54_v25 }
 0x210   :  { %v160_v27 = vpop.f32.mrb[0].mxu0 }
 0x211   :  { %v161_v28 = vadd.f32 %v183_v26, %v160_v27  ;;  %v219_v29 = vpop.f32.mrb[1].mxu0 }
 0x212   :  { %v163_v30 = vpop.f32.mrb[2].mxu0 }
 0x213   :  { %166 = vst [vmem:[#allocation2] sm:$0x3] %v161_v28  ;;  %v220_v31 = vpop.f32.mrb[3].mxu0 }
 0x214   :  { %245 = shalt.err (!%p242_p4)
}
 0x215   :  { %s246_s4 = scalar_lea.hbm %s346_s5, 32 }
 0x216   :  { %p247_p5 = scmp.ne.s32.totalorder %s346_s5, %s246_s4  ;;  %p250_p6 = scmp.lt.u32.totalorder %s246_s4, %s346_s5 }
 0x218   :  { %p252_p7 = pnand %p250_p6, %p247_p5 }
 0x21a   :  { %255 = shalt.err (!%p252_p7)
}
 0x21b   :  { %176 = dma.vmem_to_hbm [thread:$0]  %s174_s16, 32, %s346_s5, [#allocation3]  }
 0x21c   :  { %256 = dma.done.wait [#allocation3], 32  }
 0x21d   :  { %257 = vsyncadd [#allocation3], 4294967264 }
 0x21e   :  { %180 = vsyncpa [#allocation3], 1 }

</bundles_post_ra>
